<compile_context>
chip_gen: v7x
topology: tpu7x:2x2x1
jax: 0.10.0
libtpu: 0.0.40
codegen_flags: <defaults>
</compile_context>

<pallas_src>
import math
from functools import reduce, partial

import numpy as np
import jax
import jax.numpy as jnp
from jax.experimental import pallas as pl
from jax.experimental.pallas import tpu as pltpu


# ------------------------- fold scatter matrix (host) -----------------------

def build_fold_scatter_matrix(output_size, kernel_size, stride, padding):
    """S[k*L + l, y*W + x] = 1 when patch l with kernel offset k=(ky,kx)
    lands on output pixel (y, x).  F.fold == G @ S with
    G[c, k*L + l] = feat[l, c*K + k]."""
    H, W = output_size
    kh, kw = kernel_size
    sh, sw = stride
    ph, pw = padding
    out_h = (H + 2 * ph - kh) // sh + 1
    out_w = (W + 2 * pw - kw) // sw + 1
    L = out_h * out_w
    K = kh * kw
    S = np.zeros((K * L, H * W), dtype=np.float32)
    for ky in range(kh):
        for kx in range(kw):
            k = ky * kw + kx
            for ly in range(out_h):
                y = ly * sh - ph + ky
                if not (0 <= y < H):
                    continue
                for lx in range(out_w):
                    x = lx * sw - pw + kx
                    if not (0 <= x < W):
                        continue
                    l = ly * out_w + lx
                    S[k * L + l, y * W + x] = 1.0
    return S, L, K


# ------------------------------ fused kernel --------------------------------

def _vec2patch_kernel(x_ref, w_ref, s_ref, bfold_ref, o_ref, g2_ref,
                      *, B, C, K, L):
    # x_ref    : (B*L, hidden)         all batches, rows ordered b*L + l
    # w_ref    : (K*C, hidden)         Linear weight, rows permuted to (k, c)
    # s_ref    : (K*L, H*W)  f32       0/1 fold scatter matrix (resident)
    # bfold_ref: (B*C, H*W)  f32       fold of the Linear bias (precomputed)
    # o_ref    : (B*C, H*W)            sublane/lane-dense output block
    # g2_ref   : VMEM scratch (B*C, K*L) f32

    # Stage 1: "pre-transposed" Linear in a single MXU matmul, contracting
    # over `hidden` on the last dim of both operands (no transpose needed):
    #   g[k*C + c, b*L + l] = feat[b, l, c*K + k]   (bias excluded; pre-folded)
    g = jax.lax.dot_general(
        w_ref[...], x_ref[...],
        dimension_numbers=(((1,), (1,)), ((), ())),
        preferred_element_type=jnp.float32)                    # (K*C, B*L)

    # Relayout the 32 KiB intermediate into fold layout with static slices:
    #   g2[b*C + c, k*L + l] = g[k*C + c, b*L + l]
    # (k must move from sublanes to lanes; this is inherent to fold.)
    for b in range(B):
        for k in range(K):
            g2_ref[b * C:(b + 1) * C, k * L:(k + 1) * L] = \
                g[k * C:(k + 1) * C, b * L:(b + 1) * L]

    # Stage 2: fold as ONE deep-contraction MXU matmul:
    #   (B*C, K*L) @ (K*L, H*W)  ->  (B*C, H*W)
    folded = jnp.dot(g2_ref[...], s_ref[...],
                     preferred_element_type=jnp.float32)

    o_ref[...] = (folded + bfold_ref[...]).astype(o_ref.dtype)


def vec2patch_forward(x, w_perm, s_f32, bias_fold, *, channel, K, L, H, W):
    B, N, hidden = x.shape
    assert N == L, "sequence length must equal number of fold patch positions"
    CK = channel * K
    HW = H * W
    BC = B * channel

    # Contiguous collapses only -- no XLA transpose passes around the kernel.
    x2 = x.reshape(B * L, hidden)                       # (B*L, hidden)
    bias_bc = jnp.tile(bias_fold, (B, 1))               # (B*C, HW)

    flops = 2 * CK * hidden * (B * L) + 2 * BC * (K * L) * HW
    # Every operand (including S) is fetched exactly once: single grid step.
    bytes_accessed = 4 * (x2.size + w_perm.size + s_f32.size
                          + bias_bc.size + BC * HW)
    # Double-buffered operands + output + the relayout scratch + slack.
    vmem_limit = int(2 * bytes_accessed + 4 * BC * K * L + (2 << 20))

    kernel = partial(_vec2patch_kernel, B=B, C=channel, K=K, L=L)

    out2 = pl.pallas_call(
        kernel,
        out_shape=jax.ShapeDtypeStruct((BC, HW), x.dtype),
        grid_spec=pltpu.PrefetchScalarGridSpec(
            num_scalar_prefetch=0,
            grid=(1,),                                   # single step: overhead-bound kernel
            in_specs=[
                pl.BlockSpec((B * L, hidden), lambda i: (0, 0)),
                pl.BlockSpec((CK, hidden), lambda i: (0, 0)),
                pl.BlockSpec((K * L, HW), lambda i: (0, 0)),
                pl.BlockSpec((BC, HW), lambda i: (0, 0)),
            ],
            out_specs=pl.BlockSpec((BC, HW), lambda i: (0, 0)),
            scratch_shapes=[pltpu.VMEM((BC, K * L), jnp.float32)],
        ),
        compiler_params=pltpu.CompilerParams(
            dimension_semantics=("arbitrary",),          # no 2-TC split of a ~us kernel
            vmem_limit_bytes=vmem_limit,
        ),
        cost_estimate=pl.CostEstimate(
            flops=flops, transcendentals=0, bytes_accessed=bytes_accessed),
    )(x2, w_perm, s_f32, bias_bc)

    return out2.reshape(B, channel, H, W)                # contiguous reshape


# ----------------------------- Vec2Patch module -----------------------------

class Vec2PatchPallas:
    def __init__(self, channel, hidden, output_size, kernel_size, stride,
                 padding, key):
        c_out = reduce(lambda a, b: a * b, kernel_size) * channel
        k_w, k_b = jax.random.split(key)
        bound = 1.0 / math.sqrt(hidden)   # torch nn.Linear default init range
        self.W = jax.random.uniform(k_w, (c_out, hidden), jnp.float32,
                                    -bound, bound)
        self.b = jax.random.uniform(k_b, (c_out,), jnp.float32, -bound, bound)
        self.channel = channel
        self.hidden = hidden
        self.output_size = output_size
        self.kernel_size = kernel_size
        self.stride = stride
        self.padding = padding

        S_np, self.L, self.K = build_fold_scatter_matrix(
            output_size, kernel_size, stride, padding)
        H, Wd = output_size
        HW = H * Wd

        # f32 scatter matrix: fetched once per call (constant block index),
        # and avoids any per-use VPU upcast / bf16 rounding of the fold operand.
        self.S = jnp.asarray(S_np, jnp.float32)            # (K*L, HW)

        # Permute Linear output features from (c, k) order to (k, c) order so
        # every kernel-offset block of the Linear output is a contiguous row
        # slice -> the in-kernel relayout is plain static slicing.
        perm = np.arange(c_out).reshape(channel, self.K).T.reshape(-1)
        self.W_perm = self.W[np.asarray(perm)]             # (K*C, hidden)

        # Pre-fold the bias host-side: bias_fold[c, hw] = sum_{k,l} b[c*K+k]*S[k*L+l, hw]
        colsum = S_np.reshape(self.K, self.L, HW).sum(axis=1)            # (K, HW)
        bias_fold = np.asarray(self.b, np.float32).reshape(channel, self.K) @ colsum
        self.bias_fold = jnp.asarray(bias_fold, jnp.float32)             # (C, HW)

        # NOTE: the torch module constructs nn.LeakyReLU(0.2) in __init__ but
        # never uses it in forward(); intentionally omitted here.

    def __call__(self, x):
        B, N, Hd = x.shape
        assert Hd == self.hidden and N == self.L
        H, Wd = self.output_size
        return vec2patch_forward(
            x, self.W_perm, self.S, self.bias_fold,
            channel=self.channel, K=self.K, L=self.L, H=H, W=Wd)


# ------------------------------ Reference ------------------------------------

def reference_numpy(x, W, b, channel, output_size, kernel_size, stride,
                    padding):
    x = np.asarray(x, np.float32)
    W = np.asarray(W, np.float32)
    b = np.asarray(b, np.float32)
    B, N, Hd = x.shape
    feat = x @ W.T + b  # (B, N, C*kh*kw)
    kh, kw = kernel_size
    sh, sw = stride
    ph, pw = padding
    H, Wo = output_size
    out_w = (Wo + 2 * pw - kw) // sw + 1
    out = np.zeros((B, channel, H, Wo), np.float32)
    for bi in range(B):
        for l in range(N):
            ly, lx = divmod(l, out_w)
            for c in range(channel):
                for ky in range(kh):
                    for kx in range(kw):
                        y = ly * sh - ph + ky
                        xo = lx * sw - pw + kx
                        if 0 <= y < H and 0 <= xo < Wo:
                            out[bi, c, y, xo] += feat[
                                bi, l, c * kh * kw + ky * kw + kx]
    return out


# --------------------------------- Main --------------------------------------

if __name__ == "__main__":
    channel = 4
    hidden = 32
    output_size = (16, 16)
    kernel_size = (4, 4)
    stride = (2, 2)
    padding = (1, 1)
    batch = 2

    key = jax.random.PRNGKey(0)
    k_param, k_x = jax.random.split(key)

    mod = Vec2PatchPallas(channel, hidden, output_size, kernel_size, stride,
                          padding, k_param)

    n_patches = mod.L  # (16+2-4)//2+1 = 8 per dim -> 64 patch positions
    x = jax.random.normal(k_x, (batch, n_patches, hidden), jnp.float32)

    out = mod(x)
    out = jax.block_until_ready(out)

    ref = reference_numpy(x, mod.W, mod.b, channel, output_size, kernel_size,
                          stride, padding)
    np.testing.assert_allclose(np.asarray(out), ref, rtol=1e-3, atol=1e-3)

    print("KERNEL_OK")
</pallas_src>

<mosaic_0001>
module attributes {stable_mosaic.version = 11 : i64} {
  func.func @_vec2patch_kernel(%arg0: i32, %arg1: memref<128x32xf32, #tpu.memory_space<vmem>>, %arg2: memref<64x32xf32, #tpu.memory_space<vmem>>, %arg3: memref<1024x256xf32, #tpu.memory_space<vmem>>, %arg4: memref<8x256xf32, #tpu.memory_space<vmem>>, %arg5: memref<8x256xf32, #tpu.memory_space<vmem>>, %arg6: memref<8x1024xf32, #tpu.memory_space<vmem>>) attributes {dimension_semantics = [#tpu.dimension_semantics<arbitrary>], iteration_bounds = array<i64: 1>, scalar_prefetch = 0 : i64, scratch_operands = 1 : i64, tpu.core_type = #tpu.core_type<tc>, window_params = [{pipeline_mode = #tpu.pipeline_mode<synchronous>, transform_indices = @transform_0, window_bounds = array<i64: 128, 32>}, {pipeline_mode = #tpu.pipeline_mode<synchronous>, transform_indices = @transform_1, window_bounds = array<i64: 64, 32>}, {pipeline_mode = #tpu.pipeline_mode<synchronous>, transform_indices = @transform_2, window_bounds = array<i64: 1024, 256>}, {pipeline_mode = #tpu.pipeline_mode<synchronous>, transform_indices = @transform_3, window_bounds = array<i64: 8, 256>}, {pipeline_mode = #tpu.pipeline_mode<synchronous>, transform_indices = @transform_4, window_bounds = array<i64: 8, 256>}]} {
    %c0 = arith.constant 0 : index
    %c0_0 = arith.constant 0 : index
    %0 = vector.load %arg2[%c0, %c0_0] : memref<64x32xf32, #tpu.memory_space<vmem>>, vector<64x32xf32>
    %c0_1 = arith.constant 0 : index
    %c0_2 = arith.constant 0 : index
    %1 = vector.load %arg1[%c0_1, %c0_2] : memref<128x32xf32, #tpu.memory_space<vmem>>, vector<128x32xf32>
    %cst = arith.constant dense<0.000000e+00> : vector<64x128xf32>
    %2 = tpu.matmul %0, %1, %cst {dimension_numbers = #tpu.dot_dimension_numbers<[1], [1], [0], [0], [0, 0, 1, 0], [], []>} : vector<64x32xf32>, vector<128x32xf32>, vector<64x128xf32> -> vector<64x128xf32>
    %3 = vector.extract_strided_slice %2 {offsets = [0, 0], sizes = [4, 64], strides = [1, 1]} : vector<64x128xf32> to vector<4x64xf32>
    %c0_3 = arith.constant 0 : index
    %c0_4 = arith.constant 0 : index
    %4 = vector.load %arg6[%c0_3, %c0_4] : memref<8x1024xf32, #tpu.memory_space<vmem>>, vector<4x64xf32>
    tpu.vector_store %arg6[%c0_3, %c0_4], %3 {strides = array<i32>} : memref<8x1024xf32, #tpu.memory_space<vmem>>, vector<4x64xf32>,
    %5 = vector.extract_strided_slice %2 {offsets = [4, 0], sizes = [4, 64], strides = [1, 1]} : vector<64x128xf32> to vector<4x64xf32>
    %c0_5 = arith.constant 0 : index
    %c64 = arith.constant 64 : index
    %6 = vector.load %arg6[%c0_5, %c64] : memref<8x1024xf32, #tpu.memory_space<vmem>>, vector<4x64xf32>
    tpu.vector_store %arg6[%c0_5, %c64], %5 {strides = array<i32>} : memref<8x1024xf32, #tpu.memory_space<vmem>>, vector<4x64xf32>,
    %7 = vector.extract_strided_slice %2 {offsets = [8, 0], sizes = [4, 64], strides = [1, 1]} : vector<64x128xf32> to vector<4x64xf32>
    %c0_6 = arith.constant 0 : index
    %c128 = arith.constant 128 : index
    %8 = vector.load %arg6[%c0_6, %c128] : memref<8x1024xf32, #tpu.memory_space<vmem>>, vector<4x64xf32>
    tpu.vector_store %arg6[%c0_6, %c128], %7 {strides = array<i32>} : memref<8x1024xf32, #tpu.memory_space<vmem>>, vector<4x64xf32>,
    %9 = vector.extract_strided_slice %2 {offsets = [12, 0], sizes = [4, 64], strides = [1, 1]} : vector<64x128xf32> to vector<4x64xf32>
    %c0_7 = arith.constant 0 : index
    %c192 = arith.constant 192 : index
    %10 = vector.load %arg6[%c0_7, %c192] : memref<8x1024xf32, #tpu.memory_space<vmem>>, vector<4x64xf32>
    tpu.vector_store %arg6[%c0_7, %c192], %9 {strides = array<i32>} : memref<8x1024xf32, #tpu.memory_space<vmem>>, vector<4x64xf32>,
    %11 = vector.extract_strided_slice %2 {offsets = [16, 0], sizes = [4, 64], strides = [1, 1]} : vector<64x128xf32> to vector<4x64xf32>
    %c0_8 = arith.constant 0 : index
    %c256 = arith.constant 256 : index
    %12 = vector.load %arg6[%c0_8, %c256] : memref<8x1024xf32, #tpu.memory_space<vmem>>, vector<4x64xf32>
    tpu.vector_store %arg6[%c0_8, %c256], %11 {strides = array<i32>} : memref<8x1024xf32, #tpu.memory_space<vmem>>, vector<4x64xf32>,
    %13 = vector.extract_strided_slice %2 {offsets = [20, 0], sizes = [4, 64], strides = [1, 1]} : vector<64x128xf32> to vector<4x64xf32>
    %c0_9 = arith.constant 0 : index
    %c320 = arith.constant 320 : index
    %14 = vector.load %arg6[%c0_9, %c320] : memref<8x1024xf32, #tpu.memory_space<vmem>>, vector<4x64xf32>
    tpu.vector_store %arg6[%c0_9, %c320], %13 {strides = array<i32>} : memref<8x1024xf32, #tpu.memory_space<vmem>>, vector<4x64xf32>,
    %15 = vector.extract_strided_slice %2 {offsets = [24, 0], sizes = [4, 64], strides = [1, 1]} : vector<64x128xf32> to vector<4x64xf32>
    %c0_10 = arith.constant 0 : index
    %c384 = arith.constant 384 : index
    %16 = vector.load %arg6[%c0_10, %c384] : memref<8x1024xf32, #tpu.memory_space<vmem>>, vector<4x64xf32>
    tpu.vector_store %arg6[%c0_10, %c384], %15 {strides = array<i32>} : memref<8x1024xf32, #tpu.memory_space<vmem>>, vector<4x64xf32>,
    %17 = vector.extract_strided_slice %2 {offsets = [28, 0], sizes = [4, 64], strides = [1, 1]} : vector<64x128xf32> to vector<4x64xf32>
    %c0_11 = arith.constant 0 : index
    %c448 = arith.constant 448 : index
    %18 = vector.load %arg6[%c0_11, %c448] : memref<8x1024xf32, #tpu.memory_space<vmem>>, vector<4x64xf32>
    tpu.vector_store %arg6[%c0_11, %c448], %17 {strides = array<i32>} : memref<8x1024xf32, #tpu.memory_space<vmem>>, vector<4x64xf32>,
    %19 = vector.extract_strided_slice %2 {offsets = [32, 0], sizes = [4, 64], strides = [1, 1]} : vector<64x128xf32> to vector<4x64xf32>
    %c0_12 = arith.constant 0 : index
    %c512 = arith.constant 512 : index
    %20 = vector.load %arg6[%c0_12, %c512] : memref<8x1024xf32, #tpu.memory_space<vmem>>, vector<4x64xf32>
    tpu.vector_store %arg6[%c0_12, %c512], %19 {strides = array<i32>} : memref<8x1024xf32, #tpu.memory_space<vmem>>, vector<4x64xf32>,
    %21 = vector.extract_strided_slice %2 {offsets = [36, 0], sizes = [4, 64], strides = [1, 1]} : vector<64x128xf32> to vector<4x64xf32>
    %c0_13 = arith.constant 0 : index
    %c576 = arith.constant 576 : index
    %22 = vector.load %arg6[%c0_13, %c576] : memref<8x1024xf32, #tpu.memory_space<vmem>>, vector<4x64xf32>
    tpu.vector_store %arg6[%c0_13, %c576], %21 {strides = array<i32>} : memref<8x1024xf32, #tpu.memory_space<vmem>>, vector<4x64xf32>,
    %23 = vector.extract_strided_slice %2 {offsets = [40, 0], sizes = [4, 64], strides = [1, 1]} : vector<64x128xf32> to vector<4x64xf32>
    %c0_14 = arith.constant 0 : index
    %c640 = arith.constant 640 : index
    %24 = vector.load %arg6[%c0_14, %c640] : memref<8x1024xf32, #tpu.memory_space<vmem>>, vector<4x64xf32>
    tpu.vector_store %arg6[%c0_14, %c640], %23 {strides = array<i32>} : memref<8x1024xf32, #tpu.memory_space<vmem>>, vector<4x64xf32>,
    %25 = vector.extract_strided_slice %2 {offsets = [44, 0], sizes = [4, 64], strides = [1, 1]} : vector<64x128xf32> to vector<4x64xf32>
    %c0_15 = arith.constant 0 : index
    %c704 = arith.constant 704 : index
    %26 = vector.load %arg6[%c0_15, %c704] : memref<8x1024xf32, #tpu.memory_space<vmem>>, vector<4x64xf32>
    tpu.vector_store %arg6[%c0_15, %c704], %25 {strides = array<i32>} : memref<8x1024xf32, #tpu.memory_space<vmem>>, vector<4x64xf32>,
    %27 = vector.extract_strided_slice %2 {offsets = [48, 0], sizes = [4, 64], strides = [1, 1]} : vector<64x128xf32> to vector<4x64xf32>
    %c0_16 = arith.constant 0 : index
    %c768 = arith.constant 768 : index
    %28 = vector.load %arg6[%c0_16, %c768] : memref<8x1024xf32, #tpu.memory_space<vmem>>, vector<4x64xf32>
    tpu.vector_store %arg6[%c0_16, %c768], %27 {strides = array<i32>} : memref<8x1024xf32, #tpu.memory_space<vmem>>, vector<4x64xf32>,
    %29 = vector.extract_strided_slice %2 {offsets = [52, 0], sizes = [4, 64], strides = [1, 1]} : vector<64x128xf32> to vector<4x64xf32>
    %c0_17 = arith.constant 0 : index
    %c832 = arith.constant 832 : index
    %30 = vector.load %arg6[%c0_17, %c832] : memref<8x1024xf32, #tpu.memory_space<vmem>>, vector<4x64xf32>
    tpu.vector_store %arg6[%c0_17, %c832], %29 {strides = array<i32>} : memref<8x1024xf32, #tpu.memory_space<vmem>>, vector<4x64xf32>,
    %31 = vector.extract_strided_slice %2 {offsets = [56, 0], sizes = [4, 64], strides = [1, 1]} : vector<64x128xf32> to vector<4x64xf32>
    %c0_18 = arith.constant 0 : index
    %c896 = arith.constant 896 : index
    %32 = vector.load %arg6[%c0_18, %c896] : memref<8x1024xf32, #tpu.memory_space<vmem>>, vector<4x64xf32>
    tpu.vector_store %arg6[%c0_18, %c896], %31 {strides = array<i32>} : memref<8x1024xf32, #tpu.memory_space<vmem>>, vector<4x64xf32>,
    %33 = vector.extract_strided_slice %2 {offsets = [60, 0], sizes = [4, 64], strides = [1, 1]} : vector<64x128xf32> to vector<4x64xf32>
    %c0_19 = arith.constant 0 : index
    %c960 = arith.constant 960 : index
    %34 = vector.load %arg6[%c0_19, %c960] : memref<8x1024xf32, #tpu.memory_space<vmem>>, vector<4x64xf32>
    tpu.vector_store %arg6[%c0_19, %c960], %33 {strides = array<i32>} : memref<8x1024xf32, #tpu.memory_space<vmem>>, vector<4x64xf32>,
    %35 = vector.extract_strided_slice %2 {offsets = [0, 64], sizes = [4, 64], strides = [1, 1]} : vector<64x128xf32> to vector<4x64xf32>
    %c4 = arith.constant 4 : index
    %c0_20 = arith.constant 0 : index
    %36 = vector.load %arg6[%c4, %c0_20] : memref<8x1024xf32, #tpu.memory_space<vmem>>, vector<4x64xf32>
    tpu.vector_store %arg6[%c4, %c0_20], %35 {strides = array<i32>} : memref<8x1024xf32, #tpu.memory_space<vmem>>, vector<4x64xf32>,
    %37 = vector.extract_strided_slice %2 {offsets = [4, 64], sizes = [4, 64], strides = [1, 1]} : vector<64x128xf32> to vector<4x64xf32>
    %c4_21 = arith.constant 4 : index
    %c64_22 = arith.constant 64 : index
    %38 = vector.load %arg6[%c4_21, %c64_22] : memref<8x1024xf32, #tpu.memory_space<vmem>>, vector<4x64xf32>
    tpu.vector_store %arg6[%c4_21, %c64_22], %37 {strides = array<i32>} : memref<8x1024xf32, #tpu.memory_space<vmem>>, vector<4x64xf32>,
    %39 = vector.extract_strided_slice %2 {offsets = [8, 64], sizes = [4, 64], strides = [1, 1]} : vector<64x128xf32> to vector<4x64xf32>
    %c4_23 = arith.constant 4 : index
    %c128_24 = arith.constant 128 : index
    %40 = vector.load %arg6[%c4_23, %c128_24] : memref<8x1024xf32, #tpu.memory_space<vmem>>, vector<4x64xf32>
    tpu.vector_store %arg6[%c4_23, %c128_24], %39 {strides = array<i32>} : memref<8x1024xf32, #tpu.memory_space<vmem>>, vector<4x64xf32>,
    %41 = vector.extract_strided_slice %2 {offsets = [12, 64], sizes = [4, 64], strides = [1, 1]} : vector<64x128xf32> to vector<4x64xf32>
    %c4_25 = arith.constant 4 : index
    %c192_26 = arith.constant 192 : index
    %42 = vector.load %arg6[%c4_25, %c192_26] : memref<8x1024xf32, #tpu.memory_space<vmem>>, vector<4x64xf32>
    tpu.vector_store %arg6[%c4_25, %c192_26], %41 {strides = array<i32>} : memref<8x1024xf32, #tpu.memory_space<vmem>>, vector<4x64xf32>,
    %43 = vector.extract_strided_slice %2 {offsets = [16, 64], sizes = [4, 64], strides = [1, 1]} : vector<64x128xf32> to vector<4x64xf32>
    %c4_27 = arith.constant 4 : index
    %c256_28 = arith.constant 256 : index
    %44 = vector.load %arg6[%c4_27, %c256_28] : memref<8x1024xf32, #tpu.memory_space<vmem>>, vector<4x64xf32>
    tpu.vector_store %arg6[%c4_27, %c256_28], %43 {strides = array<i32>} : memref<8x1024xf32, #tpu.memory_space<vmem>>, vector<4x64xf32>,
    %45 = vector.extract_strided_slice %2 {offsets = [20, 64], sizes = [4, 64], strides = [1, 1]} : vector<64x128xf32> to vector<4x64xf32>
    %c4_29 = arith.constant 4 : index
    %c320_30 = arith.constant 320 : index
    %46 = vector.load %arg6[%c4_29, %c320_30] : memref<8x1024xf32, #tpu.memory_space<vmem>>, vector<4x64xf32>
    tpu.vector_store %arg6[%c4_29, %c320_30], %45 {strides = array<i32>} : memref<8x1024xf32, #tpu.memory_space<vmem>>, vector<4x64xf32>,
    %47 = vector.extract_strided_slice %2 {offsets = [24, 64], sizes = [4, 64], strides = [1, 1]} : vector<64x128xf32> to vector<4x64xf32>
    %c4_31 = arith.constant 4 : index
    %c384_32 = arith.constant 384 : index
    %48 = vector.load %arg6[%c4_31, %c384_32] : memref<8x1024xf32, #tpu.memory_space<vmem>>, vector<4x64xf32>
    tpu.vector_store %arg6[%c4_31, %c384_32], %47 {strides = array<i32>} : memref<8x1024xf32, #tpu.memory_space<vmem>>, vector<4x64xf32>,
    %49 = vector.extract_strided_slice %2 {offsets = [28, 64], sizes = [4, 64], strides = [1, 1]} : vector<64x128xf32> to vector<4x64xf32>
    %c4_33 = arith.constant 4 : index
    %c448_34 = arith.constant 448 : index
    %50 = vector.load %arg6[%c4_33, %c448_34] : memref<8x1024xf32, #tpu.memory_space<vmem>>, vector<4x64xf32>
    tpu.vector_store %arg6[%c4_33, %c448_34], %49 {strides = array<i32>} : memref<8x1024xf32, #tpu.memory_space<vmem>>, vector<4x64xf32>,
    %51 = vector.extract_strided_slice %2 {offsets = [32, 64], sizes = [4, 64], strides = [1, 1]} : vector<64x128xf32> to vector<4x64xf32>
    %c4_35 = arith.constant 4 : index
    %c512_36 = arith.constant 512 : index
    %52 = vector.load %arg6[%c4_35, %c512_36] : memref<8x1024xf32, #tpu.memory_space<vmem>>, vector<4x64xf32>
    tpu.vector_store %arg6[%c4_35, %c512_36], %51 {strides = array<i32>} : memref<8x1024xf32, #tpu.memory_space<vmem>>, vector<4x64xf32>,
    %53 = vector.extract_strided_slice %2 {offsets = [36, 64], sizes = [4, 64], strides = [1, 1]} : vector<64x128xf32> to vector<4x64xf32>
    %c4_37 = arith.constant 4 : index
    %c576_38 = arith.constant 576 : index
    %54 = vector.load %arg6[%c4_37, %c576_38] : memref<8x1024xf32, #tpu.memory_space<vmem>>, vector<4x64xf32>
    tpu.vector_store %arg6[%c4_37, %c576_38], %53 {strides = array<i32>} : memref<8x1024xf32, #tpu.memory_space<vmem>>, vector<4x64xf32>,
    %55 = vector.extract_strided_slice %2 {offsets = [40, 64], sizes = [4, 64], strides = [1, 1]} : vector<64x128xf32> to vector<4x64xf32>
    %c4_39 = arith.constant 4 : index
    %c640_40 = arith.constant 640 : index
    %56 = vector.load %arg6[%c4_39, %c640_40] : memref<8x1024xf32, #tpu.memory_space<vmem>>, vector<4x64xf32>
    tpu.vector_store %arg6[%c4_39, %c640_40], %55 {strides = array<i32>} : memref<8x1024xf32, #tpu.memory_space<vmem>>, vector<4x64xf32>,
    %57 = vector.extract_strided_slice %2 {offsets = [44, 64], sizes = [4, 64], strides = [1, 1]} : vector<64x128xf32> to vector<4x64xf32>
    %c4_41 = arith.constant 4 : index
    %c704_42 = arith.constant 704 : index
    %58 = vector.load %arg6[%c4_41, %c704_42] : memref<8x1024xf32, #tpu.memory_space<vmem>>, vector<4x64xf32>
    tpu.vector_store %arg6[%c4_41, %c704_42], %57 {strides = array<i32>} : memref<8x1024xf32, #tpu.memory_space<vmem>>, vector<4x64xf32>,
    %59 = vector.extract_strided_slice %2 {offsets = [48, 64], sizes = [4, 64], strides = [1, 1]} : vector<64x128xf32> to vector<4x64xf32>
    %c4_43 = arith.constant 4 : index
    %c768_44 = arith.constant 768 : index
    %60 = vector.load %arg6[%c4_43, %c768_44] : memref<8x1024xf32, #tpu.memory_space<vmem>>, vector<4x64xf32>
    tpu.vector_store %arg6[%c4_43, %c768_44], %59 {strides = array<i32>} : memref<8x1024xf32, #tpu.memory_space<vmem>>, vector<4x64xf32>,
    %61 = vector.extract_strided_slice %2 {offsets = [52, 64], sizes = [4, 64], strides = [1, 1]} : vector<64x128xf32> to vector<4x64xf32>
    %c4_45 = arith.constant 4 : index
    %c832_46 = arith.constant 832 : index
    %62 = vector.load %arg6[%c4_45, %c832_46] : memref<8x1024xf32, #tpu.memory_space<vmem>>, vector<4x64xf32>
    tpu.vector_store %arg6[%c4_45, %c832_46], %61 {strides = array<i32>} : memref<8x1024xf32, #tpu.memory_space<vmem>>, vector<4x64xf32>,
    %63 = vector.extract_strided_slice %2 {offsets = [56, 64], sizes = [4, 64], strides = [1, 1]} : vector<64x128xf32> to vector<4x64xf32>
    %c4_47 = arith.constant 4 : index
    %c896_48 = arith.constant 896 : index
    %64 = vector.load %arg6[%c4_47, %c896_48] : memref<8x1024xf32, #tpu.memory_space<vmem>>, vector<4x64xf32>
    tpu.vector_store %arg6[%c4_47, %c896_48], %63 {strides = array<i32>} : memref<8x1024xf32, #tpu.memory_space<vmem>>, vector<4x64xf32>,
    %65 = vector.extract_strided_slice %2 {offsets = [60, 64], sizes = [4, 64], strides = [1, 1]} : vector<64x128xf32> to vector<4x64xf32>
    %c4_49 = arith.constant 4 : index
    %c960_50 = arith.constant 960 : index
    %66 = vector.load %arg6[%c4_49, %c960_50] : memref<8x1024xf32, #tpu.memory_space<vmem>>, vector<4x64xf32>
    tpu.vector_store %arg6[%c4_49, %c960_50], %65 {strides = array<i32>} : memref<8x1024xf32, #tpu.memory_space<vmem>>, vector<4x64xf32>,
    %c0_51 = arith.constant 0 : index
    %c0_52 = arith.constant 0 : index
    %67 = vector.load %arg6[%c0_51, %c0_52] : memref<8x1024xf32, #tpu.memory_space<vmem>>, vector<8x1024xf32>
    %c0_53 = arith.constant 0 : index
    %c0_54 = arith.constant 0 : index
    %68 = vector.load %arg3[%c0_53, %c0_54] : memref<1024x256xf32, #tpu.memory_space<vmem>>, vector<1024x256xf32>
    %cst_55 = arith.constant dense<0.000000e+00> : vector<8x256xf32>
    %69 = tpu.matmul %67, %68, %cst_55 {dimension_numbers = #tpu.dot_dimension_numbers<[1], [0], [0], [1], [0, 0, 1, 1], [], []>} : vector<8x1024xf32>, vector<1024x256xf32>, vector<8x256xf32> -> vector<8x256xf32>
    %c0_56 = arith.constant 0 : index
    %c0_57 = arith.constant 0 : index
    %70 = vector.load %arg4[%c0_56, %c0_57] : memref<8x256xf32, #tpu.memory_space<vmem>>, vector<8x256xf32>
    %71 = arith.addf %69, %70 : vector<8x256xf32>
    %c0_58 = arith.constant 0 : index
    %c0_59 = arith.constant 0 : index
    %72 = vector.load %arg5[%c0_58, %c0_59] : memref<8x256xf32, #tpu.memory_space<vmem>>, vector<8x256xf32>
    tpu.vector_store %arg5[%c0_58, %c0_59], %71 {strides = array<i32>} : memref<8x256xf32, #tpu.memory_space<vmem>>, vector<8x256xf32>,
    return
  }
  func.func @transform_0(%arg0: i32) -> (i32, i32) {
    %c0_i32 = arith.constant 0 : i32
    %c0_i32_0 = arith.constant 0 : i32
    %c0_i32_1 = arith.constant 0 : i32
    return %c0_i32, %c0_i32_0 : i32, i32
  }
  func.func @transform_1(%arg0: i32) -> (i32, i32) {
    %c0_i32 = arith.constant 0 : i32
    %c0_i32_0 = arith.constant 0 : i32
    %c0_i32_1 = arith.constant 0 : i32
    return %c0_i32, %c0_i32_0 : i32, i32
  }
  func.func @transform_2(%arg0: i32) -> (i32, i32) {
    %c0_i32 = arith.constant 0 : i32
    %c0_i32_0 = arith.constant 0 : i32
    %c0_i32_1 = arith.constant 0 : i32
    return %c0_i32, %c0_i32_0 : i32, i32
  }
  func.func @transform_3(%arg0: i32) -> (i32, i32) {
    %c0_i32 = arith.constant 0 : i32
    %c0_i32_0 = arith.constant 0 : i32
    %c0_i32_1 = arith.constant 0 : i32
    return %c0_i32, %c0_i32_0 : i32, i32
  }
  func.func @transform_4(%arg0: i32) -> (i32, i32) {
    %c0_i32 = arith.constant 0 : i32
    %c0_i32_0 = arith.constant 0 : i32
    %c0_i32_1 = arith.constant 0 : i32
    return %c0_i32, %c0_i32_0 : i32, i32
  }
}

</mosaic_0001>

<bundles_post_ra>
// kernel: tpu_custom_call.1
= control target key start
LH: loop header
LB: loop body
LE: loop exit
PB: predicated region body
PF: predicated region fallthrough
CT: control target
= control target key end

     0   :  { %9 = vsyncpa [#allocation4], 0  ;;  %s1567_s0 = inlined_call_operand.vmem [shape: f32[128,32], index: 0, kind: input, shape index: {}]   ;;  %s1568_s1 = inlined_call_operand.vmem [shape: f32[64,32], index: 1, kind: input, shape index: {}]   ;;  %s1569_s2 = inlined_call_operand.hbm [shape: f32[1024,256], index: 2, kind: input, shape index: {}]   ;;  %s1570_s3 = inlined_call_operand.vmem [shape: f32[8,256], index: 3, kind: input, shape index: {}]   ;;  %s1571_s4 = inlined_call_operand.hbm [shape: f32[8,256], index: 4, kind: output, shape index: {}]  }
   0x1   :  { %10 = vsyncpa [#allocation5], 0  ;;  %s1334_s15 = smov [#allocation3]   ;;  %s1286_s19 = scalar_lea.hbm %s1569_s2, 32768 }
   0x2   :  { %s20_s16 = sshll.u32 %s1334_s15, 4  ;;  %p1287_p0 = scmp.ne.s32.totalorder %s1569_s2, %s1286_s19  ;;  %s21_s16 = int_to_ptr.vmem [resolvable:$true] %s20_s16 }
   0x3   :  { %p1290_p1 = scmp.lt.u32.totalorder %s1286_s19, %s1569_s2 }
   0x5   :  { %p1292_p2 = pnand %p1290_p1, %p1287_p0 }
   0x7   :  { %1295 = shalt.err (!%p1292_p2)
}
   0x8   :  { %s1296_s24 = scalar_lea.vmem %s21_s16, 32768  ;;  %p1301_p4 = scmp.lt.s32.totalorder %s21_s16, %s21_s16 }
   0x9   :  { %p1297_p3 = scmp.ne.s32.totalorder %s21_s16, %s1296_s24  ;;  %p1302_p5 = scmp.lt.s32.totalorder %s1296_s24, %s1296_s24 }
   0xb   :  { %p1303_p6 = por %p1302_p5, %p1301_p4 }
   0xd   :  { %p1304_p7 = pnand %p1303_p6, %p1297_p3 }
   0xf   :  { %1307 = shalt.err (!%p1304_p7)
}
  0x10   :  { %s1335_s25 = smov 256   ;;  %s1336_s26 = smov 16  }
  0x11   :  { %26 = dma.hbm_to_vmem [thread:$0]  %s1569_s2, 32768, %s21_s16, [#allocation4], %s1335_s25, %s1335_s25, %s1336_s26  }
  0x12   :  { %1330 = dma.done.wait [#allocation4], 32768  }
  0x13   :  { %1331 = vsyncadd [#allocation4], 4294934528  ;;  %vm56_vm0 = vcmask 261120   ;;  %v40_v1 = vld [vmem:[%s1567_s0] sm:$0xff]  ;;  %v41_v2 = vld [vmem:[%s1567_s0 + $0x8] sm:$0xff]  ;;  %vm234_vm2 = vcmask 519168  }
  0x14   :  { %vm1378_vm1 = vmpackc.low %vm56_vm0, %vm56_vm0  ;;  %v42_v3 = vld [vmem:[%s1567_s0 + $0x10] sm:$0xff]  ;;  %v969_v4 = vpack.c.bf16 %v41_v2, %v40_v1  ;;  %v43_v5 = vld [vmem:[%s1567_s0 + $0x18] sm:$0xff]  ;;  %vm241_vm3 = vcmask 1043968   ;;  %vm292_vm4 = vcmask 523268   ;;  %vm294_vm5 = vcmask 1048068   ;;  %s1338_s26 = smov [#allocation6]  }
  0x15   :  { %v975_v6 = vpack.c.bf16 %v43_v5, %v42_v3  ;;  %v32_v7 = vld [vmem:[%s1568_s1] sm:$0xff]  ;;  %v45_v9 = vld [vmem:[%s1567_s0 + $0x28] sm:$0xff]  ;;  %v46_v11 = vld [vmem:[%s1567_s0 + $0x30] sm:$0xff]  ;;  %s868_s27 = sshll.u32 %s1338_s26, 4  ;;  %s869_s27 = int_to_ptr.vmem [resolvable:$true] %s868_s27 }
  0x16   :  { %971 = vmatprep.subr.msk.bf16.mxu0 %vm1378_vm1, %v969_v4  ;;  %v44_v8 = vld [vmem:[%s1567_s0 + $0x20] sm:$0xff]  ;;  %957 = vmatprep.mubr.msk.f32.mxu0 %vm56_vm0, %v32_v7  ;;  %v47_v12 = vld [vmem:[%s1567_s0 + $0x38] sm:$0xff]  ;;  %v49_v15 = vld [vmem:[%s1567_s0 + $0x48] sm:$0xff]  ;;  %s1308_s28 = scalar_lea.vmem %s869_s27, 256  ;;  %p1313_p9 = scmp.lt.s32.totalorder %s869_s27, %s869_s27 }
  0x17   :  { %974 = vmatpush3.bf16.xpose.msk.msra.mxu0 %vm1378_vm1, %v969_v4  ;;  %v981_v10 = vpack.c.bf16 %v45_v9, %v44_v8  ;;  %v987_v13 = vpack.c.bf16 %v47_v12, %v46_v11  ;;  %v48_v14 = vld [vmem:[%s1567_s0 + $0x40] sm:$0xff]  ;;  %v50_v17 = vld [vmem:[%s1567_s0 + $0x50] sm:$0xff]  ;;  %v51_v18 = vld [vmem:[%s1567_s0 + $0x58] sm:$0xff]  ;;  %p1309_p8 = scmp.ne.s32.totalorder %s869_s27, %s1308_s28  ;;  %p1314_p10 = scmp.lt.s32.totalorder %s1308_s28, %s1308_s28 }
  0x18   :  { %977 = vmatprep.subr.msk.bf16.mxu0 %vm1378_vm1, %v975_v6  ;;  %v993_v16 = vpack.c.bf16 %v49_v15, %v48_v14  ;;  %v999_v19 = vpack.c.bf16 %v51_v18, %v50_v17  ;;  %v52_v20 = vld [vmem:[%s1567_s0 + $0x60] sm:$0xff]  ;;  %v53_v21 = vld [vmem:[%s1567_s0 + $0x68] sm:$0xff]  ;;  %v54_v23 = vld [vmem:[%s1567_s0 + $0x70] sm:$0xff] }
  0x19   :  { %v1005_v22 = vpack.c.bf16 %v53_v21, %v52_v20  ;;  %v55_v24 = vld [vmem:[%s1567_s0 + $0x78] sm:$0xff]  ;;  %v33_v26 = vld [vmem:[%s1568_s1 + $0x8] sm:$0xff]  ;;  %v34_v27 = vld [vmem:[%s1568_s1 + $0x10] sm:$0xff]  ;;  %p1315_p11 = por %p1314_p10, %p1313_p9 }
  0x1a   :  { %v1011_v25 = vpack.c.bf16 %v55_v24, %v54_v23  ;;  %v35_v28 = vld [vmem:[%s1568_s1 + $0x18] sm:$0xff]  ;;  %v36_v29 = vld [vmem:[%s1568_s1 + $0x20] sm:$0xff]  ;;  %v37_v30 = vld [vmem:[%s1568_s1 + $0x28] sm:$0xff] }
  0x1b   :  { %v38_v31 = vld [vmem:[%s1568_s1 + $0x30] sm:$0xff]  ;;  %v39_v32 = vld [vmem:[%s1568_s1 + $0x38] sm:$0xff]  ;;  %v383_v33 = vld [vmem:[#allocation3 + $0x208] sm:$0xff]  ;;  %s1337_s1 = smov 64   ;;  %p1316_p12 = pnand %p1315_p11, %p1309_p8 }
  0x1c   :  { %v385_v34 = vld [vmem:[#allocation3 + $0x218] sm:$0xff]  ;;  %v382_v35 = vld [vmem:[#allocation3 + $0x200] sm:$0xff]  ;;  %v384_v37 = vld [vmem:[#allocation3 + $0x210] sm:$0xff] }
  0x1d   :  { %v1081_v36 = vpack.c.bf16 %v385_v34, %v383_v33  ;;  %v387_v38 = vld [vmem:[#allocation3 + $0x228] sm:$0xff]  ;;  %v389_v39 = vld [vmem:[#allocation3 + $0x238] sm:$0xff]  ;;  %v1083_v40 = vpack.c.bf16 %v384_v37, %v382_v35  ;;  %v386_v42 = vld [vmem:[#allocation3 + $0x220] sm:$0xff] }
  0x1e   :  { %v1085_v41 = vpack.c.bf16 %v389_v39, %v387_v38  ;;  %v388_v43 = vld [vmem:[#allocation3 + $0x230] sm:$0xff]  ;;  %v391_v44 = vld [vmem:[#allocation3 + $0x248] sm:$0xff]  ;;  %v393_v45 = vld [vmem:[#allocation3 + $0x258] sm:$0xff] }
  0x1f   :  { %980 = vmatpush3.bf16.xpose.msk.msra.mxu0 %vm1378_vm1, %v975_v6  ;;  %1082 = vmatprep.subr.bf16.mxu1 %v1081_v36  ;;  %v319_v46 = vld [vmem:[#allocation3 + $0x8] sm:$0xff]  ;;  %v321_v47 = vld [vmem:[#allocation3 + $0x18] sm:$0xff]  ;;  %v1087_v48 = vpack.c.bf16 %v388_v43, %v386_v42  ;;  %v390_v50 = vld [vmem:[#allocation3 + $0x240] sm:$0xff]  ;;  %v1089_v52 = vpack.c.bf16 %v393_v45, %v391_v44 }
  0x20   :  { %983 = vmatprep.subr.msk.bf16.mxu0 %vm1378_vm1, %v981_v10  ;;  %1084 = vmatpush1.bf16.msra.mxu1 %v1083_v40  ;;  %v1017_v49 = vpack.c.bf16 %v321_v47, %v319_v46  ;;  %v318_v51 = vld [vmem:[#allocation3] sm:$0xff]  ;;  %v392_v53 = vld [vmem:[#allocation3 + $0x250] sm:$0xff]  ;;  %v395_v55 = vld [vmem:[#allocation3 + $0x268] sm:$0xff] }
  0x21   :  { %1086 = vmatprep.subr.bf16.mxu1 %v1085_v41  ;;  %v320_v54 = vld [vmem:[#allocation3 + $0x10] sm:$0xff]  ;;  %v397_v57 = vld [vmem:[#allocation3 + $0x278] sm:$0xff]  ;;  %v323_v58 = vld [vmem:[#allocation3 + $0x28] sm:$0xff]  ;;  %v1091_v63 = vpack.c.bf16 %v392_v53, %v390_v50 }
  0x22   :  { %v1019_v56 = vpack.c.bf16 %v320_v54, %v318_v51  ;;  %v325_v59 = vld [vmem:[#allocation3 + $0x38] sm:$0xff]  ;;  %v322_v61 = vld [vmem:[#allocation3 + $0x20] sm:$0xff]  ;;  %v324_v62 = vld [vmem:[#allocation3 + $0x30] sm:$0xff]  ;;  %v1093_v3 = vpack.c.bf16 %v397_v57, %v395_v55 }
  0x23   :  { %v1021_v60 = vpack.c.bf16 %v325_v59, %v323_v58  ;;  %v394_v0 = vld [vmem:[#allocation3 + $0x260] sm:$0xff]  ;;  %v1023_v1 = vpack.c.bf16 %v324_v62, %v322_v61  ;;  %v327_v2 = vld [vmem:[#allocation3 + $0x48] sm:$0xff]  ;;  %v396_v4 = vld [vmem:[#allocation3 + $0x270] sm:$0xff] }
  0x24   :  { %1088 = vmatpush1.bf16.msra.mxu1 %v1087_v48  ;;  %v399_v5 = vld [vmem:[#allocation3 + $0x288] sm:$0xff]  ;;  %v329_v6 = vld [vmem:[#allocation3 + $0x58] sm:$0xff]  ;;  %v326_v9 = vld [vmem:[#allocation3 + $0x40] sm:$0xff] }
  0x25   :  { %1090 = vmatprep.subr.bf16.mxu1 %v1089_v52  ;;  %v401_v7 = vld [vmem:[#allocation3 + $0x298] sm:$0xff]  ;;  %v1025_v8 = vpack.c.bf16 %v329_v6, %v327_v2  ;;  %v331_v11 = vld [vmem:[#allocation3 + $0x68] sm:$0xff]  ;;  %v398_v14 = vld [vmem:[#allocation3 + $0x280] sm:$0xff] }
  0x26   :  { %v333_v12 = vld [vmem:[#allocation3 + $0x78] sm:$0xff]  ;;  %v400_v15 = vld [vmem:[#allocation3 + $0x290] sm:$0xff]  ;;  %v1097_v17 = vpack.c.bf16 %v401_v7, %v399_v5  ;;  %v403_v18 = vld [vmem:[#allocation3 + $0x2a8] sm:$0xff] }
  0x27   :  { %986 = vmatpush3.bf16.xpose.msk.msra.mxu0 %vm1378_vm1, %v981_v10  ;;  %v328_v10 = vld [vmem:[#allocation3 + $0x50] sm:$0xff]  ;;  %v330_v20 = vld [vmem:[#allocation3 + $0x60] sm:$0xff]  ;;  %v335_v23 = vld [vmem:[#allocation3 + $0x88] sm:$0xff] }
  0x28   :  { %989 = vmatprep.subr.msk.bf16.mxu0 %vm1378_vm1, %v987_v13  ;;  %1092 = vmatpush1.bf16.msra.mxu1 %v1091_v63  ;;  %v332_v21 = vld [vmem:[#allocation3 + $0x70] sm:$0xff]  ;;  %v337_v24 = vld [vmem:[#allocation3 + $0x98] sm:$0xff]  ;;  %v339_v35 = vld [vmem:[#allocation3 + $0xa8] sm:$0xff] }
  0x29   :  { %1094 = vmatprep.subr.bf16.mxu1 %v1093_v3  ;;  %v336_v33 = vld [vmem:[#allocation3 + $0x90] sm:$0xff]  ;;  %v409_v34 = vld [vmem:[#allocation3 + $0x2d8] sm:$0xff]  ;;  %v406_v38 = vld [vmem:[#allocation3 + $0x2c0] sm:$0xff] }
  0x2a   :  { %v341_v36 = vld [vmem:[#allocation3 + $0xb8] sm:$0xff]  ;;  %v408_v39 = vld [vmem:[#allocation3 + $0x2d0] sm:$0xff]  ;;  %v411_v42 = vld [vmem:[#allocation3 + $0x2e8] sm:$0xff] }
  0x2b   :  { %v1037_v43 = vpack.c.bf16 %v341_v36, %v339_v35  ;;  %v338_v44 = vld [vmem:[#allocation3 + $0xa0] sm:$0xff]  ;;  %v340_v45 = vld [vmem:[#allocation3 + $0xb0] sm:$0xff]  ;;  %v413_v46 = vld [vmem:[#allocation3 + $0x2f8] sm:$0xff] }
  0x2c   :  { %v343_v47 = vld [vmem:[#allocation3 + $0xc8] sm:$0xff]  ;;  %v345_v48 = vld [vmem:[#allocation3 + $0xd8] sm:$0xff]  ;;  %v410_v50 = vld [vmem:[#allocation3 + $0x2e0] sm:$0xff]  ;;  %v1039_v52 = vpack.c.bf16 %v340_v45, %v338_v44  ;;  %v1109_v53 = vpack.c.bf16 %v413_v46, %v411_v42 }
  0x2d   :  { %v412_v51 = vld [vmem:[#allocation3 + $0x2f0] sm:$0xff]  ;;  %v415_v54 = vld [vmem:[#allocation3 + $0x308] sm:$0xff]  ;;  %v1041_v55 = vpack.c.bf16 %v345_v48, %v343_v47  ;;  %v417_v58 = vld [vmem:[#allocation3 + $0x318] sm:$0xff] }
  0x2e   :  { %v344_v57 = vld [vmem:[#allocation3 + $0xd0] sm:$0xff]  ;;  %v347_v59 = vld [vmem:[#allocation3 + $0xe8] sm:$0xff]  ;;  %v1111_v61 = vpack.c.bf16 %v412_v51, %v410_v50  ;;  %v414_v62 = vld [vmem:[#allocation3 + $0x300] sm:$0xff] }
  0x2f   :  { %992 = vmatpush3.bf16.xpose.msk.msra.mxu0 %vm1378_vm1, %v987_v13  ;;  %v1095_v13 = vpack.c.bf16 %v396_v4, %v394_v0  ;;  %v416_v63 = vld [vmem:[#allocation3 + $0x310] sm:$0xff]  ;;  %v419_v2 = vld [vmem:[#allocation3 + $0x328] sm:$0xff]  ;;  %v346_v4 = vld [vmem:[#allocation3 + $0xe0] sm:$0xff] }
  0x30   :  { %995 = vmatprep.subr.msk.bf16.mxu0 %vm1378_vm1, %v993_v16  ;;  %v348_v5 = vld [vmem:[#allocation3 + $0xf0] sm:$0xff]  ;;  %v421_v6 = vld [vmem:[#allocation3 + $0x338] sm:$0xff]  ;;  %v351_v7 = vld [vmem:[#allocation3 + $0x108] sm:$0xff] }
  0x31   :  { %1096 = vmatpush1.bf16.msra.mxu1 %v1095_v13  ;;  %v1117_v13 = vpack.c.bf16 %v421_v6, %v419_v2  ;;  %v433_v42 = vld [vmem:[#allocation3 + $0x398] sm:$0xff]  ;;  %v430_v46 = vld [vmem:[#allocation3 + $0x380] sm:$0xff]  ;;  %v432_v47 = vld [vmem:[#allocation3 + $0x390] sm:$0xff] }
  0x32   :  { %1098 = vmatprep.subr.bf16.mxu1 %v1097_v17  ;;  %v352_v17 = vld [vmem:[#allocation3 + $0x110] sm:$0xff]  ;;  %v1131_v48 = vpack.c.bf16 %v432_v47, %v430_v46  ;;  %v437_v50 = vld [vmem:[#allocation3 + $0x3b8] sm:$0xff]  ;;  %v438_v2 = vld [vmem:[#allocation3 + $0x3c0] sm:$0xff] }
  0x33   :  { %v368_v6 = vld [vmem:[#allocation3 + $0x190] sm:$0xff] }
  0x37   :  { %998 = vmatpush3.bf16.xpose.msk.msra.mxu0 %vm1378_vm1, %v993_v16  ;;  %v1027_v16 = vpack.c.bf16 %v328_v10, %v326_v9  ;;  %v1115_v9 = vpack.c.bf16 %v416_v63, %v414_v62  ;;  %v418_v10 = vld [vmem:[#allocation3 + $0x320] sm:$0xff]  ;;  %v441_v62 = vld [vmem:[#allocation3 + $0x3d8] sm:$0xff] }
  0x38   :  { %1001 = vmatprep.subr.msk.bf16.mxu0 %vm1378_vm1, %v999_v19 }
  0x3f   :  { %1004 = vmatpush3.bf16.xpose.msk.msra.mxu0 %vm1378_vm1, %v999_v19  ;;  %v1029_v19 = vpack.c.bf16 %v333_v12, %v331_v11  ;;  %v420_v11 = vld [vmem:[#allocation3 + $0x330] sm:$0xff]  ;;  %v1047_v12 = vpack.c.bf16 %v348_v5, %v346_v4  ;;  %v366_v5 = vld [vmem:[#allocation3 + $0x180] sm:$0xff] }
  0x40   :  { %1007 = vmatprep.subr.msk.bf16.mxu0 %vm1378_vm1, %v1005_v22  ;;  %v440_v4 = vld [vmem:[#allocation3 + $0x3d0] sm:$0xff] }
  0x47   :  { %1010 = vmatpush3.bf16.xpose.msk.msra.mxu0 %vm1378_vm1, %v1005_v22  ;;  %v405_v22 = vld [vmem:[#allocation3 + $0x2b8] sm:$0xff] }
  0x48   :  { %1013 = vmatprep.subr.msk.bf16.mxu0 %vm1378_vm1, %v1011_v25 }
  0x4f   :  { %1016 = vmatpush3.bf16.xpose.msk.msra.mxu0 %vm1378_vm1, %v1011_v25  ;;  %v1099_v25 = vpack.c.bf16 %v400_v15, %v398_v14  ;;  %v423_v14 = vld [vmem:[#allocation3 + $0x348] sm:$0xff] }
  0x50   :  { %1018 = vmatprep.subr.bf16.mxu0 %v1017_v49  ;;  %v1107_v49 = vpack.c.bf16 %v408_v39, %v406_v38  ;;  %v358_v39 = vld [vmem:[#allocation3 + $0x140] sm:$0xff] }
  0x51   :  { %1100 = vmatpush1.bf16.msra.mxu1 %v1099_v25 }
  0x56   :  { %958 = vmatmul.mubr.msk.f32.vlgmr.msra.gmra.mrb[0].mxu0 %vm56_vm0, %v33_v26  ;;  %v402_v26 = vld [vmem:[#allocation3 + $0x2a0] sm:$0xff] }
  0x57   :  { %960 = vmatprep.mubr.msk.f32.mxu0 %vm56_vm0, %v34_v27  ;;  %1020 = vmatpush1.bf16.msra.mxu0 %v1019_v56  ;;  %v404_v27 = vld [vmem:[#allocation3 + $0x2b0] sm:$0xff]  ;;  %v342_v56 = vld [vmem:[#allocation3 + $0xc0] sm:$0xff] }
  0x58   :  { %1022 = vmatprep.subr.bf16.mxu0 %v1021_v60  ;;  %v1103_v37 = vpack.c.bf16 %v404_v27, %v402_v26  ;;  %v349_v60 = vld [vmem:[#allocation3 + $0xf8] sm:$0xff]  ;;  %v1043_v0 = vpack.c.bf16 %v344_v57, %v342_v56  ;;  %v427_v26 = vld [vmem:[#allocation3 + $0x368] sm:$0xff]  ;;  %v436_v56 = vld [vmem:[#allocation3 + $0x3b0] sm:$0xff] }
  0x59   :  { %v1045_v3 = vpack.c.bf16 %v349_v60, %v347_v59  ;;  %v362_v57 = vld [vmem:[#allocation3 + $0x160] sm:$0xff] }
  0x5a   :  { %961 = vmatmul.mubr.msk.f32.gmra.mrb[2].mxu0 %vm56_vm0, %v35_v28  ;;  %v1031_v28 = vpack.c.bf16 %v332_v21, %v330_v20  ;;  %v357_v20 = vld [vmem:[#allocation3 + $0x138] sm:$0xff]  ;;  %v1119_v21 = vpack.c.bf16 %v420_v11, %v418_v10 }
  0x5b   :  { %963 = vmatprep.mubr.msk.f32.mxu0 %vm56_vm0, %v36_v29  ;;  %1024 = vmatpush1.bf16.msra.mxu0 %v1023_v1  ;;  %v1101_v29 = vpack.c.bf16 %v405_v22, %v403_v18  ;;  %v1113_v1 = vpack.c.bf16 %v417_v58, %v415_v54  ;;  %v425_v18 = vld [vmem:[#allocation3 + $0x358] sm:$0xff]  ;;  %v422_v22 = vld [vmem:[#allocation3 + $0x340] sm:$0xff]  ;;  %v364_v58 = vld [vmem:[#allocation3 + $0x170] sm:$0xff] }
  0x5c   :  { %1026 = vmatprep.subr.bf16.mxu0 %v1025_v8  ;;  %v353_v8 = vld [vmem:[#allocation3 + $0x118] sm:$0xff]  ;;  %v1121_v25 = vpack.c.bf16 %v425_v18, %v423_v14  ;;  %v434_v54 = vld [vmem:[#allocation3 + $0x3a0] sm:$0xff]  ;;  %v1063_v60 = vpack.c.bf16 %v364_v58, %v362_v57  ;;  %v444_v18 = vld [vmem:[#allocation3 + $0x3f0] sm:$0xff] }
  0x5d   :  { %1102 = vmatprep.subr.bf16.mxu1 %v1101_v29  ;;  %v1049_v15 = vpack.c.bf16 %v353_v8, %v351_v7  ;;  %v356_v29 = vld [vmem:[#allocation3 + $0x130] sm:$0xff]  ;;  %v1135_v59 = vpack.c.bf16 %v436_v56, %v434_v54  ;;  %v1139_v7 = vpack.c.bf16 %v440_v4, %v438_v2  ;;  %v1067_v8 = vpack.c.bf16 %v368_v6, %v366_v5  ;;  %v445_v10 = vld [vmem:[#allocation3 + $0x3f8] sm:$0xff]  ;;  %v446_v57 = vld [vmem:[#allocation3 + $0x400] sm:$0xff] }
  0x5e   :  { %964 = vmatmul.mubr.msk.f32.gmra.mrb[4].mxu0 %vm56_vm0, %v37_v30  ;;  %v407_v30 = vld [vmem:[#allocation3 + $0x2c8] sm:$0xff]  ;;  %1104 = vmatpush1.bf16.msra.mxu1 %v1103_v37  ;;  %v428_v37 = vld [vmem:[#allocation3 + $0x370] sm:$0xff]  ;;  %v373_v14 = vld [vmem:[#allocation3 + $0x1b8] sm:$0xff] }
  0x5f   :  { %966 = vmatprep.mubr.msk.f32.mxu0 %vm56_vm0, %v38_v31  ;;  %1028 = vmatpush1.bf16.msra.mxu0 %v1027_v16  ;;  %v1033_v31 = vpack.c.bf16 %v337_v24, %v335_v23  ;;  %v1105_v41 = vpack.c.bf16 %v409_v34, %v407_v30  ;;  %v350_v16 = vld [vmem:[#allocation3 + $0x100] sm:$0xff]  ;;  %v424_v23 = vld [vmem:[#allocation3 + $0x350] sm:$0xff]  ;;  %v429_v30 = vld [vmem:[#allocation3 + $0x378] sm:$0xff] }
  0x60   :  { %1030 = vmatprep.subr.bf16.mxu0 %v1029_v19  ;;  %v355_v19 = vld [vmem:[#allocation3 + $0x128] sm:$0xff]  ;;  %v1051_v24 = vpack.c.bf16 %v352_v17, %v350_v16  ;;  %v426_v34 = vld [vmem:[#allocation3 + $0x360] sm:$0xff]  ;;  %v1125_v36 = vpack.c.bf16 %v429_v30, %v427_v26  ;;  %v448_v58 = vld [vmem:[#allocation3 + $0x410] sm:$0xff] }
  0x61   :  { %1106 = vmatprep.subr.bf16.mxu1 %v1105_v41  ;;  %v1053_v27 = vpack.c.bf16 %v357_v20, %v355_v19  ;;  %v431_v41 = vld [vmem:[#allocation3 + $0x388] sm:$0xff]  ;;  %v370_v19 = vld [vmem:[#allocation3 + $0x1a0] sm:$0xff]  ;;  %v372_v20 = vld [vmem:[#allocation3 + $0x1b0] sm:$0xff] }
  0x62   :  { %967 = vmatmul.mubr.msk.f32.gmra.mrb[6].mxu0 %vm56_vm0, %v39_v32  ;;  %v334_v32 = vld [vmem:[#allocation3 + $0x80] sm:$0xff]  ;;  %1108 = vmatpush1.bf16.msra.mxu1 %v1107_v49  ;;  %v1129_v45 = vpack.c.bf16 %v433_v42, %v431_v41  ;;  %v435_v49 = vld [vmem:[#allocation3 + $0x3a8] sm:$0xff] }
  0x63   :  { %1032 = vmatpush1.bf16.msra.mxu0 %v1031_v28  ;;  %v1035_v40 = vpack.c.bf16 %v336_v33, %v334_v32  ;;  %1110 = vmatprep.subr.bf16.mxu1 %v1109_v53  ;;  %v354_v28 = vld [vmem:[#allocation3 + $0x120] sm:$0xff]  ;;  %v361_v32 = vld [vmem:[#allocation3 + $0x158] sm:$0xff]  ;;  %v1123_v33 = vpack.c.bf16 %v424_v23, %v422_v22  ;;  %v1133_v51 = vpack.c.bf16 %v437_v50, %v435_v49  ;;  %v447_v23 = vld [vmem:[#allocation3 + $0x408] sm:$0xff] }
  0x64   :  { %1034 = vmatprep.subr.bf16.mxu0 %v1033_v31  ;;  %v359_v31 = vld [vmem:[#allocation3 + $0x148] sm:$0xff]  ;;  %v1055_v35 = vpack.c.bf16 %v356_v29, %v354_v28  ;;  %v365_v53 = vld [vmem:[#allocation3 + $0x178] sm:$0xff]  ;;  %v1071_v22 = vpack.c.bf16 %v372_v20, %v370_v19  ;;  %v378_v42 = vld [vmem:[#allocation3 + $0x1e0] sm:$0xff] }
  0x65   :  { %v1057_v38 = vpack.c.bf16 %v361_v32, %v359_v31  ;;  %v377_v28 = vld [vmem:[#allocation3 + $0x1d8] sm:$0xff]  ;;  %v374_v32 = vld [vmem:[#allocation3 + $0x1c0] sm:$0xff]  ;;  %v455_v4 = vld [vmem:[#allocation3 + $0x448] sm:$0xff] }
  0x66   :  { %1112 = vmatpush1.bf16.msra.mxu1 %v1111_v61  ;;  %v439_v61 = vld [vmem:[#allocation3 + $0x3c8] sm:$0xff]  ;;  %v450_v2 = vld [vmem:[#allocation3 + $0x420] sm:$0xff]  ;;  %v460_v19 = vld [vmem:[#allocation3 + $0x470] sm:$0xff] }
  0x67   :  { %1036 = vmatpush1.bf16.msra.mxu0 %v1035_v40  ;;  %1114 = vmatprep.subr.bf16.mxu1 %v1113_v1  ;;  %v360_v40 = vld [vmem:[#allocation3 + $0x150] sm:$0xff]  ;;  %v1137_v63 = vpack.c.bf16 %v441_v62, %v439_v61  ;;  %v369_v1 = vld [vmem:[#allocation3 + $0x198] sm:$0xff]  ;;  %v1147_v62 = vpack.c.bf16 %v448_v58, %v446_v57  ;;  %v487_v57 = vld [vmem:[#allocation3 + $0x548] sm:$0xff] }
  0x68   :  { %1038 = vmatprep.subr.bf16.mxu0 %v1037_v43  ;;  %v1127_v43 = vpack.c.bf16 %v428_v37, %v426_v34  ;;  %v1059_v44 = vpack.c.bf16 %v360_v40, %v358_v39  ;;  %v379_v39 = vld [vmem:[#allocation3 + $0x1e8] sm:$0xff]  ;;  %v381_v40 = vld [vmem:[#allocation3 + $0x1f8] sm:$0xff] }
  0x69   :  { %v1077_v41 = vpack.c.bf16 %v381_v40, %v379_v39  ;;  %v453_v61 = vld [vmem:[#allocation3 + $0x438] sm:$0xff]  ;;  %v475_v39 = vld [vmem:[#allocation3 + $0x4e8] sm:$0xff] }
  0x6a   :  { %1116 = vmatpush1.bf16.msra.mxu1 %v1115_v9  ;;  %v443_v9 = vld [vmem:[#allocation3 + $0x3e8] sm:$0xff]  ;;  %v477_v40 = vld [vmem:[#allocation3 + $0x4f8] sm:$0xff] }
  0x6b   :  { %1040 = vmatpush1.bf16.msra.mxu0 %v1039_v52  ;;  %1118 = vmatprep.subr.bf16.mxu1 %v1117_v13  ;;  %v363_v52 = vld [vmem:[#allocation3 + $0x168] sm:$0xff]  ;;  %v489_v58 = vld [vmem:[#allocation3 + $0x558] sm:$0xff] }
  0x6c   :  { %1042 = vmatprep.subr.bf16.mxu0 %v1041_v55  ;;  %v1061_v55 = vpack.c.bf16 %v365_v53, %v363_v52  ;;  %v371_v13 = vld [vmem:[#allocation3 + $0x1a8] sm:$0xff] }
  0x6d   :  { %v1069_v17 = vpack.c.bf16 %v373_v14, %v371_v13  ;;  %v459_v14 = vld [vmem:[#allocation3 + $0x468] sm:$0xff] }
  0x6e   :  { %1120 = vmatpush1.bf16.msra.mxu1 %v1119_v21 }
  0x6f   :  { %1044 = vmatpush1.bf16.msra.mxu0 %v1043_v0  ;;  %1122 = vmatprep.subr.bf16.mxu1 %v1121_v25  ;;  %v367_v0 = vld [vmem:[#allocation3 + $0x188] sm:$0xff] }
  0x70   :  { %1046 = vmatprep.subr.bf16.mxu0 %v1045_v3  ;;  %v1065_v3 = vpack.c.bf16 %v369_v1, %v367_v0 }
  0x72   :  { %1124 = vmatpush1.bf16.msra.mxu1 %v1123_v33  ;;  %v376_v33 = vld [vmem:[#allocation3 + $0x1d0] sm:$0xff] }
  0x73   :  { %1048 = vmatpush1.bf16.msra.mxu0 %v1047_v12  ;;  %1126 = vmatprep.subr.bf16.mxu1 %v1125_v36  ;;  %v1141_v12 = vpack.c.bf16 %v445_v10, %v443_v9  ;;  %v1075_v34 = vpack.c.bf16 %v376_v33, %v374_v32  ;;  %v468_v32 = vld [vmem:[#allocation3 + $0x4b0] sm:$0xff]  ;;  %v471_v33 = vld [vmem:[#allocation3 + $0x4c8] sm:$0xff] }
  0x74   :  { %1050 = vmatprep.subr.bf16.mxu0 %v1049_v15  ;;  %v442_v15 = vld [vmem:[#allocation3 + $0x3e0] sm:$0xff] }
  0x75   :  { %v1143_v21 = vpack.c.bf16 %v444_v18, %v442_v15  ;;  %v461_v15 = vld [vmem:[#allocation3 + $0x478] sm:$0xff]  ;;  %v458_v18 = vld [vmem:[#allocation3 + $0x460] sm:$0xff] }
  0x76   :  { %1128 = vmatpush1.bf16.msra.mxu1 %v1127_v43  ;;  %v380_v43 = vld [vmem:[#allocation3 + $0x1f0] sm:$0xff] }
  0x77   :  { %1052 = vmatpush1.bf16.msra.mxu0 %v1051_v24  ;;  %1130 = vmatprep.subr.bf16.mxu1 %v1129_v45  ;;  %v449_v24 = vld [vmem:[#allocation3 + $0x418] sm:$0xff]  ;;  %v1079_v45 = vpack.c.bf16 %v380_v43, %v378_v42  ;;  %v1173_v42 = vpack.c.bf16 %v477_v40, %v475_v39  ;;  %v474_v43 = vld [vmem:[#allocation3 + $0x4e0] sm:$0xff]  ;;  %v516_v40 = vld [vmem:[#allocation3 + $0x630] sm:$0xff] }
  0x78   :  { %1054 = vmatprep.subr.bf16.mxu0 %v1053_v27  ;;  %v1145_v26 = vpack.c.bf16 %v449_v24, %v447_v23  ;;  %v375_v27 = vld [vmem:[#allocation3 + $0x1c8] sm:$0xff]  ;;  %v1159_v23 = vpack.c.bf16 %v460_v19, %v458_v18  ;;  %v505_v18 = vld [vmem:[#allocation3 + $0x5d8] sm:$0xff]  ;;  %v514_v39 = vld [vmem:[#allocation3 + $0x620] sm:$0xff] }
  0x79   :  { %v1073_v31 = vpack.c.bf16 %v377_v28, %v375_v27  ;;  %v467_v27 = vld [vmem:[#allocation3 + $0x4a8] sm:$0xff]  ;;  %v469_v28 = vld [vmem:[#allocation3 + $0x4b8] sm:$0xff] }
  0x7a   :  { %1132 = vmatpush1.bf16.msra.mxu1 %v1131_v48 }
  0x7b   :  { %1056 = vmatpush1.bf16.msra.mxu0 %v1055_v35  ;;  %1134 = vmatprep.subr.bf16.mxu1 %v1133_v51 }
  0x7c   :  { %1058 = vmatprep.subr.bf16.mxu0 %v1057_v38 }
  0x7e   :  { %1136 = vmatpush1.bf16.msra.mxu1 %v1135_v59 }
  0x7f   :  { %1060 = vmatpush1.bf16.msra.mxu0 %v1059_v44  ;;  %1138 = vmatprep.subr.bf16.mxu1 %v1137_v63 }
  0x80   :  { %1062 = vmatprep.subr.bf16.mxu0 %v1061_v55 }
  0x82   :  { %1140 = vmatpush1.bf16.msra.mxu1 %v1139_v7  ;;  %v457_v7 = vld [vmem:[#allocation3 + $0x458] sm:$0xff] }
  0x83   :  { %1064 = vmatpush1.bf16.msra.mxu0 %v1063_v60  ;;  %1142 = vmatprep.subr.bf16.mxu1 %v1141_v12  ;;  %v451_v60 = vld [vmem:[#allocation3 + $0x428] sm:$0xff]  ;;  %v1153_v10 = vpack.c.bf16 %v457_v7, %v455_v4  ;;  %v456_v12 = vld [vmem:[#allocation3 + $0x450] sm:$0xff] }
  0x84   :  { %1066 = vmatprep.subr.bf16.mxu0 %v1065_v3  ;;  %v1149_v1 = vpack.c.bf16 %v453_v61, %v451_v60  ;;  %v452_v3 = vld [vmem:[#allocation3 + $0x430] sm:$0xff]  ;;  %v1185_v60 = vpack.c.bf16 %v489_v58, %v487_v57  ;;  %v486_v61 = vld [vmem:[#allocation3 + $0x540] sm:$0xff] }
  0x85   :  { %v492_v4 = vld [vmem:[#allocation3 + $0x570] sm:$0xff] }
  0x86   :  { %1144 = vmatpush1.bf16.msra.mxu1 %v1143_v21  ;;  %v463_v21 = vld [vmem:[#allocation3 + $0x488] sm:$0xff] }
  0x87   :  { %1068 = vmatpush1.bf16.msra.mxu0 %v1067_v8  ;;  %1146 = vmatprep.subr.bf16.mxu1 %v1145_v26  ;;  %v1151_v8 = vpack.c.bf16 %v452_v3, %v450_v2  ;;  %v464_v26 = vld [vmem:[#allocation3 + $0x490] sm:$0xff]  ;;  %v490_v3 = vld [vmem:[#allocation3 + $0x560] sm:$0xff] }
  0x88   :  { %1070 = vmatprep.subr.bf16.mxu0 %v1069_v17  ;;  %v1157_v17 = vpack.c.bf16 %v461_v15, %v459_v14  ;;  %v1191_v7 = vpack.c.bf16 %v492_v4, %v490_v3  ;;  %v498_v15 = vld [vmem:[#allocation3 + $0x5a0] sm:$0xff]  ;;  %v535_v3 = vld [vmem:[#allocation3 + $0x6c8] sm:$0xff]  ;;  %v537_v4 = vld [vmem:[#allocation3 + $0x6d8] sm:$0xff] }
  0x8b   :  { %1072 = vmatpush1.bf16.msra.mxu0 %v1071_v22  ;;  %v465_v22 = vld [vmem:[#allocation3 + $0x498] sm:$0xff] }
  0x8c   :  { %1074 = vmatprep.subr.bf16.mxu0 %v1073_v31  ;;  %v1161_v24 = vpack.c.bf16 %v465_v22, %v463_v21  ;;  %v466_v31 = vld [vmem:[#allocation3 + $0x4a0] sm:$0xff]  ;;  %v504_v22 = vld [vmem:[#allocation3 + $0x5d0] sm:$0xff] }
  0x8d   :  { %v502_v21 = vld [vmem:[#allocation3 + $0x5c0] sm:$0xff] }
  0x8f   :  { %1076 = vmatpush1.bf16.msra.mxu0 %v1075_v34  ;;  %v473_v34 = vld [vmem:[#allocation3 + $0x4d8] sm:$0xff] }
  0x90   :  { %1078 = vmatprep.subr.bf16.mxu0 %v1077_v41 }
  0x93   :  { %1080 = vmatpush1.bf16.msra.mxu0 %v1079_v45  ;;  %v479_v45 = vld [vmem:[#allocation3 + $0x508] sm:$0xff] }
 0x129   :  { %v1494_v11 = vpop.f32.mrb[0].mxu0 }
 0x12a   :  { %243 = vst.msk [vmem:[#allocation2 + $0x8] sm:$0xf] %vm234_vm2, %v1494_v11  ;;  %v1498_v16 = vpop.f32.mrb[1].mxu0  ;;  %v245_v47 = vrot.slane %v1494_v11, 4 }
 0x12b   :  { %235 = vst.msk [vmem:[#allocation2] sm:$0xf] %vm234_vm2, %v1498_v16  ;;  %v237_v50 = vrot.slane %v1498_v16, 4 }
 0x12d   :  { %v962_v25 = vpop.f32.mrb[2].mxu0 }
 0x12e   :  { %257 = vst.msk [vmem:[#allocation2 + $0x18] sm:$0xf] %vm234_vm2, %v962_v25  ;;  %v205_v29 = vpop.f32.mrb[3].mxu0  ;;  %v259_v30 = vrot.slane %v962_v25, 4 }
 0x12f   :  { %250 = vst.msk [vmem:[#allocation2 + $0x10] sm:$0xf] %vm234_vm2, %v205_v29  ;;  %v252_v36 = vrot.slane %v205_v29, 4 }
 0x130   :  { %260 = vrot.lane.b32.xlu0 %v259_v30, %s1337_s1  ;;  %v1165_v30 = vpack.c.bf16 %v469_v28, %v467_v27  ;;  %v506_v27 = vld [vmem:[#allocation3 + $0x5e0] sm:$0xff]  ;;  %v508_v28 = vld [vmem:[#allocation3 + $0x5f0] sm:$0xff] }
 0x131   :  { %v965_v35 = vpop.f32.mrb[4].mxu0 }
 0x132   :  { %271 = vst.msk [vmem:[#allocation2 + $0x28] sm:$0xf] %vm234_vm2, %v965_v35  ;;  %v273_v37 = vrot.slane %v965_v35, 4  ;;  %v215_v38 = vpop.f32.mrb[5].mxu0 }
 0x133   :  { %264 = vst.msk [vmem:[#allocation2 + $0x20] sm:$0xf] %vm234_vm2, %v215_v38  ;;  %v266_v44 = vrot.slane %v215_v38, 4 }
 0x134   :  { %253 = vrot.lane.b32.xlu0 %v252_v36, %s1337_s1  ;;  %274 = vrot.lane.b32.xlu1 %v273_v37, %s1337_s1  ;;  %v1169_v36 = vpack.c.bf16 %v473_v34, %v471_v33  ;;  %v470_v37 = vld [vmem:[#allocation3 + $0x4c0] sm:$0xff]  ;;  %v512_v34 = vld [vmem:[#allocation3 + $0x610] sm:$0xff] }
 0x135   :  { %v968_v46 = vpop.f32.mrb[6].mxu0  ;;  %v510_v33 = vld [vmem:[#allocation3 + $0x600] sm:$0xff] }
 0x136   :  { %285 = vst.msk [vmem:[#allocation2 + $0x38] sm:$0xf] %vm234_vm2, %v968_v46  ;;  %v1511_v48 = vpop.f32.mrb[7].mxu0  ;;  %v287_v49 = vrot.slane %v968_v46, 4 }
 0x137   :  { %278 = vst.msk [vmem:[#allocation2 + $0x30] sm:$0xf] %vm234_vm2, %v1511_v48  ;;  %v280_v51 = vrot.slane %v1511_v48, 4 }
 0x138   :  { %246 = vrot.lane.b32.xlu0 %v245_v47, %s1337_s1  ;;  %267 = vrot.lane.b32.xlu1 %v266_v44, %s1337_s1  ;;  %v476_v44 = vld [vmem:[#allocation3 + $0x4f0] sm:$0xff] }
 0x139   :  { %v1175_v47 = vpack.c.bf16 %v476_v44, %v474_v43  ;;  %v521_v43 = vld [vmem:[#allocation3 + $0x658] sm:$0xff] }
 0x13c   :  { %238 = vrot.lane.b32.xlu1 %v237_v50, %s1337_s1  ;;  %288 = vrot.lane.b32.xlu0 %v287_v49, %s1337_s1  ;;  %v478_v49 = vld [vmem:[#allocation3 + $0x500] sm:$0xff]  ;;  %v480_v50 = vld [vmem:[#allocation3 + $0x510] sm:$0xff] }
 0x140   :  { %281 = vrot.lane.b32.xlu1 %v280_v51, %s1337_s1  ;;  %v483_v51 = vld [vmem:[#allocation3 + $0x528] sm:$0xff] }
 0x1a2   :  { %v261_v52 = vpop.permute.xlu0 %260 }
 0x1a3   :  { %263 = vst.msk [vmem:[#allocation2 + $0x18] sm:$0xf] %vm241_vm3, %v261_v52 }
 0x1a4   :  { %300 = vst.msk [vmem:[#allocation2 + $0x18] sm:$0xf0] %vm292_vm4, %v261_v52  ;;  %v485_v52 = vld [vmem:[#allocation3 + $0x538] sm:$0xff] }
 0x1a5   :  { %301 = vst.msk [vmem:[#allocation2 + $0x18] sm:$0xf0] %vm294_vm5, %v962_v25  ;;  %v462_v25 = vld [vmem:[#allocation3 + $0x480] sm:$0xff] }
 0x1a6   :  { %v254_v53 = vpop.permute.xlu0 %253  ;;  %v275_v54 = vpop.permute.xlu1 %274 }
 0x1a7   :  { %256 = vst.msk [vmem:[#allocation2 + $0x10] sm:$0xf] %vm241_vm3, %v254_v53  ;;  %277 = vst.msk [vmem:[#allocation2 + $0x28] sm:$0xf] %vm241_vm3, %v275_v54 }
 0x1a8   :  { %298 = vst.msk [vmem:[#allocation2 + $0x10] sm:$0xf0] %vm292_vm4, %v254_v53  ;;  %304 = vst.msk [vmem:[#allocation2 + $0x28] sm:$0xf0] %vm292_vm4, %v275_v54  ;;  %v1179_v53 = vpack.c.bf16 %v480_v50, %v478_v49  ;;  %v1181_v54 = vpack.c.bf16 %v485_v52, %v483_v51  ;;  %v523_v49 = vld [vmem:[#allocation3 + $0x668] sm:$0xff]  ;;  %v525_v50 = vld [vmem:[#allocation3 + $0x678] sm:$0xff] }
 0x1a9   :  { %299 = vst.msk [vmem:[#allocation2 + $0x10] sm:$0xf0] %vm294_vm5, %v205_v29  ;;  %305 = vst.msk [vmem:[#allocation2 + $0x28] sm:$0xf0] %vm294_vm5, %v965_v35  ;;  %v1163_v29 = vpack.c.bf16 %v464_v26, %v462_v25  ;;  %v1167_v35 = vpack.c.bf16 %v468_v32, %v466_v31  ;;  %v1203_v25 = vpack.c.bf16 %v504_v22, %v502_v21  ;;  %v547_v21 = vld [vmem:[#allocation3 + $0x728] sm:$0xff]  ;;  %v549_v22 = vld [vmem:[#allocation3 + $0x738] sm:$0xff] }
 0x1aa   :  { %v247_v55 = vpop.permute.xlu0 %246  ;;  %v268_v56 = vpop.permute.xlu1 %267  ;;  %v1207_v31 = vpack.c.bf16 %v508_v28, %v506_v27  ;;  %v1221_v52 = vpack.c.bf16 %v525_v50, %v523_v49  ;;  %v551_v27 = vld [vmem:[#allocation3 + $0x748] sm:$0xff]  ;;  %v553_v28 = vld [vmem:[#allocation3 + $0x758] sm:$0xff]  ;;  %v562_v49 = vld [vmem:[#allocation3 + $0x7a0] sm:$0xff] }
 0x1ab   :  { %249 = vst.msk [vmem:[#allocation2 + $0x8] sm:$0xf] %vm241_vm3, %v247_v55  ;;  %270 = vst.msk [vmem:[#allocation2 + $0x20] sm:$0xf] %vm241_vm3, %v268_v56  ;;  %v564_v50 = vld [vmem:[#allocation3 + $0x7b0] sm:$0xff] }
 0x1ac   :  { %296 = vst.msk [vmem:[#allocation2 + $0x8] sm:$0xf0] %vm292_vm4, %v247_v55  ;;  %302 = vst.msk [vmem:[#allocation2 + $0x20] sm:$0xf0] %vm292_vm4, %v268_v56  ;;  %v313_v59 = vld [vmem:[#allocation2 + $0x18] sm:$0xff]  ;;  %v482_v55 = vld [vmem:[#allocation3 + $0x520] sm:$0xff] }
 0x1ad   :  { %297 = vst.msk [vmem:[#allocation2 + $0x8] sm:$0xf0] %vm294_vm5, %v1494_v11  ;;  %303 = vst.msk [vmem:[#allocation2 + $0x20] sm:$0xf0] %vm294_vm5, %v215_v38  ;;  %711 = vmatprep.mubr.f32.mxu1 %v313_v59  ;;  %v454_v11 = vld [vmem:[#allocation3 + $0x440] sm:$0xff]  ;;  %v472_v38 = vld [vmem:[#allocation3 + $0x4d0] sm:$0xff] }
 0x1ae   :  { %v239_v63 = vpop.permute.xlu1 %238  ;;  %v289_v0 = vpop.permute.xlu0 %288  ;;  %v1171_v41 = vpack.c.bf16 %v472_v38, %v470_v37  ;;  %v484_v56 = vld [vmem:[#allocation3 + $0x530] sm:$0xff]  ;;  %v1211_v37 = vpack.c.bf16 %v512_v34, %v510_v33  ;;  %v555_v33 = vld [vmem:[#allocation3 + $0x768] sm:$0xff]  ;;  %v557_v34 = vld [vmem:[#allocation3 + $0x778] sm:$0xff] }
 0x1af   :  { %242 = vst.msk [vmem:[#allocation2] sm:$0xf] %vm241_vm3, %v239_v63  ;;  %291 = vst.msk [vmem:[#allocation2 + $0x38] sm:$0xf] %vm241_vm3, %v289_v0  ;;  %v1183_v59 = vpack.c.bf16 %v484_v56, %v482_v55  ;;  %v527_v55 = vld [vmem:[#allocation3 + $0x688] sm:$0xff]  ;;  %v529_v56 = vld [vmem:[#allocation3 + $0x698] sm:$0xff] }
 0x1b0   :  { %293 = vst.msk [vmem:[#allocation2] sm:$0xf0] %vm292_vm4, %v239_v63  ;;  %308 = vst.msk [vmem:[#allocation2 + $0x38] sm:$0xf0] %vm292_vm4, %v289_v0  ;;  %v312_v5 = vld [vmem:[#allocation2 + $0x10] sm:$0xff]  ;;  %v315_v6 = vld [vmem:[#allocation2 + $0x28] sm:$0xff]  ;;  %v1225_v58 = vpack.c.bf16 %v529_v56, %v527_v55 }
 0x1b1   :  { %295 = vst.msk [vmem:[#allocation2] sm:$0xf0] %vm294_vm5, %v1498_v16  ;;  %309 = vst.msk [vmem:[#allocation2 + $0x38] sm:$0xf0] %vm294_vm5, %v968_v46  ;;  %712 = vmatmul.mubr.f32.vlgmr.msra.gmra.mrb[0].mxu1 %v312_v5  ;;  %v1155_v16 = vpack.c.bf16 %v456_v12, %v454_v11  ;;  %v481_v46 = vld [vmem:[#allocation3 + $0x518] sm:$0xff]  ;;  %v491_v63 = vld [vmem:[#allocation3 + $0x568] sm:$0xff] }
 0x1b2   :  { %1148 = vmatpush1.bf16.msra.mxu1 %v1147_v62  ;;  %782 = vmatprep.mubr.f32.mxu1 %v315_v6  ;;  %v282_v9 = vpop.permute.xlu1 %281  ;;  %v488_v62 = vld [vmem:[#allocation3 + $0x550] sm:$0xff]  ;;  %v493_v0 = vld [vmem:[#allocation3 + $0x578] sm:$0xff]  ;;  %v495_v5 = vld [vmem:[#allocation3 + $0x588] sm:$0xff] }
 0x1b3   :  { %1150 = vmatprep.subr.bf16.mxu1 %v1149_v1  ;;  %284 = vst.msk [vmem:[#allocation2 + $0x30] sm:$0xf] %vm241_vm3, %v282_v9  ;;  %v1187_v1 = vpack.c.bf16 %v488_v62, %v486_v61  ;;  %v1189_v2 = vpack.c.bf16 %v493_v0, %v491_v63  ;;  %v497_v6 = vld [vmem:[#allocation3 + $0x598] sm:$0xff]  ;;  %v499_v11 = vld [vmem:[#allocation3 + $0x5a8] sm:$0xff]  ;;  %v566_v55 = vld [vmem:[#allocation3 + $0x7c0] sm:$0xff] }
 0x1b4   :  { %306 = vst.msk [vmem:[#allocation2 + $0x30] sm:$0xf0] %vm292_vm4, %v282_v9  ;;  %v311_v13 = vld [vmem:[#allocation2 + $0x8] sm:$0xff]  ;;  %v494_v9 = vld [vmem:[#allocation3 + $0x580] sm:$0xff]  ;;  %v501_v12 = vld [vmem:[#allocation3 + $0x5b8] sm:$0xff] }
 0x1b5   :  { %307 = vst.msk [vmem:[#allocation2 + $0x30] sm:$0xf0] %vm294_vm5, %v1511_v48  ;;  %640 = vmatprep.mubr.f32.mxu0 %v311_v13  ;;  %v1177_v48 = vpack.c.bf16 %v481_v46, %v479_v45  ;;  %v1197_v14 = vpack.c.bf16 %v501_v12, %v499_v11  ;;  %v1215_v45 = vpack.c.bf16 %v516_v40, %v514_v39  ;;  %v531_v61 = vld [vmem:[#allocation3 + $0x6a8] sm:$0xff]  ;;  %v533_v62 = vld [vmem:[#allocation3 + $0x6b8] sm:$0xff]  ;;  %v568_v56 = vld [vmem:[#allocation3 + $0x7d0] sm:$0xff] }
 0x1b6   :  { %1152 = vmatpush1.bf16.msra.mxu1 %v1151_v8  ;;  %v1193_v8 = vpack.c.bf16 %v497_v6, %v495_v5  ;;  %v1229_v0 = vpack.c.bf16 %v533_v62, %v531_v61  ;;  %v1233_v6 = vpack.c.bf16 %v537_v4, %v535_v3  ;;  %v559_v39 = vld [vmem:[#allocation3 + $0x788] sm:$0xff]  ;;  %v561_v40 = vld [vmem:[#allocation3 + $0x798] sm:$0xff]  ;;  %v570_v61 = vld [vmem:[#allocation3 + $0x7e0] sm:$0xff] }
 0x1b7   :  { %1154 = vmatprep.subr.bf16.mxu1 %v1153_v10  ;;  %v496_v10 = vld [vmem:[#allocation3 + $0x590] sm:$0xff]  ;;  %v574_v3 = vld [vmem:[%s1570_s3] sm:$0xff]  ;;  %v575_v4 = vld [vmem:[%s1570_s3 + $0x8] sm:$0xff] }
 0x1b8   :  { %v310_v20 = vld [vmem:[#allocation2] sm:$0xff]  ;;  %v1195_v13 = vpack.c.bf16 %v496_v10, %v494_v9  ;;  %v317_v44 = vld [vmem:[#allocation2 + $0x38] sm:$0xff]  ;;  %v539_v9 = vld [vmem:[#allocation3 + $0x6e8] sm:$0xff] }
 0x1b9   :  { %641 = vmatmul.mubr.f32.vlgmr.msra.gmra.mrb[8].mxu0 %v310_v20  ;;  %v541_v10 = vld [vmem:[#allocation3 + $0x6f8] sm:$0xff]  ;;  %v572_v62 = vld [vmem:[#allocation3 + $0x7f0] sm:$0xff] }
 0x1ba   :  { %1156 = vmatpush1.bf16.msra.mxu1 %v1155_v16  ;;  %v500_v16 = vld [vmem:[#allocation3 + $0x5b0] sm:$0xff]  ;;  %v1237_v12 = vpack.c.bf16 %v541_v10, %v539_v9 }
 0x1bb   :  { %1158 = vmatprep.subr.bf16.mxu1 %v1157_v17  ;;  %v503_v17 = vld [vmem:[#allocation3 + $0x5c8] sm:$0xff]  ;;  %v1199_v19 = vpack.c.bf16 %v500_v16, %v498_v15  ;;  %v545_v16 = vld [vmem:[#allocation3 + $0x718] sm:$0xff] }
 0x1bc   :  { %v1201_v20 = vpack.c.bf16 %v505_v18, %v503_v17  ;;  %v543_v15 = vld [vmem:[#allocation3 + $0x708] sm:$0xff] }
 0x1bd   :  { %v1241_v18 = vpack.c.bf16 %v545_v16, %v543_v15 }
 0x1be   :  { %1160 = vmatpush1.bf16.msra.mxu1 %v1159_v23  ;;  %v507_v23 = vld [vmem:[#allocation3 + $0x5e8] sm:$0xff] }
 0x1bf   :  { %1162 = vmatprep.subr.bf16.mxu1 %v1161_v24  ;;  %v509_v24 = vld [vmem:[#allocation3 + $0x5f8] sm:$0xff] }
 0x1c0   :  { %v1205_v26 = vpack.c.bf16 %v509_v24, %v507_v23  ;;  %v1245_v24 = vpack.c.bf16 %v549_v22, %v547_v21 }
 0x1c2   :  { %1164 = vmatpush1.bf16.msra.mxu1 %v1163_v29  ;;  %v511_v29 = vld [vmem:[#allocation3 + $0x608] sm:$0xff] }
 0x1c3   :  { %1166 = vmatprep.subr.bf16.mxu1 %v1165_v30  ;;  %v513_v30 = vld [vmem:[#allocation3 + $0x618] sm:$0xff] }
 0x1c4   :  { %v1209_v32 = vpack.c.bf16 %v513_v30, %v511_v29  ;;  %v1249_v30 = vpack.c.bf16 %v553_v28, %v551_v27 }
 0x1c6   :  { %1168 = vmatpush1.bf16.msra.mxu1 %v1167_v35  ;;  %v515_v35 = vld [vmem:[#allocation3 + $0x628] sm:$0xff] }
 0x1c7   :  { %1170 = vmatprep.subr.bf16.mxu1 %v1169_v36  ;;  %v517_v36 = vld [vmem:[#allocation3 + $0x638] sm:$0xff] }
 0x1c8   :  { %v1213_v38 = vpack.c.bf16 %v517_v36, %v515_v35  ;;  %v1253_v36 = vpack.c.bf16 %v557_v34, %v555_v33 }
 0x1ca   :  { %1172 = vmatpush1.bf16.msra.mxu1 %v1171_v41  ;;  %v314_v41 = vld [vmem:[#allocation2 + $0x20] sm:$0xff] }
 0x1cb   :  { %1174 = vmatprep.subr.bf16.mxu1 %v1173_v42  ;;  %v519_v42 = vld [vmem:[#allocation3 + $0x648] sm:$0xff] }
 0x1cc   :  { %v1217_v46 = vpack.c.bf16 %v521_v43, %v519_v42  ;;  %v1257_v42 = vpack.c.bf16 %v561_v40, %v559_v39  ;;  %v558_v43 = vld [vmem:[#allocation3 + $0x780] sm:$0xff] }
 0x1ce   :  { %1176 = vmatpush1.bf16.msra.mxu1 %v1175_v47  ;;  %v518_v47 = vld [vmem:[#allocation3 + $0x640] sm:$0xff] }
 0x1cf   :  { %1178 = vmatprep.subr.bf16.mxu1 %v1177_v48  ;;  %v520_v48 = vld [vmem:[#allocation3 + $0x650] sm:$0xff] }
 0x1d0   :  { %v1219_v51 = vpack.c.bf16 %v520_v48, %v518_v47 }
 0x1d2   :  { %1180 = vmatpush1.bf16.msra.mxu1 %v1179_v53  ;;  %v522_v53 = vld [vmem:[#allocation3 + $0x660] sm:$0xff] }
 0x1d3   :  { %1182 = vmatprep.subr.bf16.mxu1 %v1181_v54  ;;  %v524_v54 = vld [vmem:[#allocation3 + $0x670] sm:$0xff] }
 0x1d4   :  { %v1223_v57 = vpack.c.bf16 %v524_v54, %v522_v53  ;;  %v1263_v53 = vpack.c.bf16 %v564_v50, %v562_v49 }
 0x1d6   :  { %1184 = vmatpush1.bf16.msra.mxu1 %v1183_v59  ;;  %v526_v59 = vld [vmem:[#allocation3 + $0x680] sm:$0xff] }
 0x1d7   :  { %1186 = vmatprep.subr.bf16.mxu1 %v1185_v60  ;;  %v528_v60 = vld [vmem:[#allocation3 + $0x690] sm:$0xff] }
 0x1d8   :  { %v1227_v63 = vpack.c.bf16 %v528_v60, %v526_v59  ;;  %v1267_v59 = vpack.c.bf16 %v568_v56, %v566_v55 }
 0x1da   :  { %1188 = vmatpush1.bf16.msra.mxu1 %v1187_v1  ;;  %v530_v1 = vld [vmem:[#allocation3 + $0x6a0] sm:$0xff] }
 0x1db   :  { %1190 = vmatprep.subr.bf16.mxu1 %v1189_v2  ;;  %v532_v2 = vld [vmem:[#allocation3 + $0x6b0] sm:$0xff] }
 0x1dc   :  { %v1231_v5 = vpack.c.bf16 %v532_v2, %v530_v1 }
 0x1de   :  { %1192 = vmatpush1.bf16.msra.mxu1 %v1191_v7  ;;  %v534_v7 = vld [vmem:[#allocation3 + $0x6c0] sm:$0xff] }
 0x1df   :  { %1194 = vmatprep.subr.bf16.mxu1 %v1193_v8  ;;  %v536_v8 = vld [vmem:[#allocation3 + $0x6d0] sm:$0xff] }
 0x1e0   :  { %v1235_v11 = vpack.c.bf16 %v536_v8, %v534_v7 }
 0x1e2   :  { %1196 = vmatpush1.bf16.msra.mxu1 %v1195_v13  ;;  %v538_v13 = vld [vmem:[#allocation3 + $0x6e0] sm:$0xff] }
 0x1e3   :  { %1198 = vmatprep.subr.bf16.mxu1 %v1197_v14  ;;  %v540_v14 = vld [vmem:[#allocation3 + $0x6f0] sm:$0xff] }
 0x1e4   :  { %v1239_v17 = vpack.c.bf16 %v540_v14, %v538_v13 }
 0x1e6   :  { %1200 = vmatpush1.bf16.msra.mxu1 %v1199_v19  ;;  %v542_v19 = vld [vmem:[#allocation3 + $0x700] sm:$0xff] }
 0x1e7   :  { %1202 = vmatprep.subr.bf16.mxu1 %v1201_v20  ;;  %v544_v20 = vld [vmem:[#allocation3 + $0x710] sm:$0xff] }
 0x1e8   :  { %v1243_v23 = vpack.c.bf16 %v544_v20, %v542_v19 }
 0x1ea   :  { %1204 = vmatpush1.bf16.msra.mxu1 %v1203_v25  ;;  %v546_v25 = vld [vmem:[#allocation3 + $0x720] sm:$0xff] }
 0x1eb   :  { %1206 = vmatprep.subr.bf16.mxu1 %v1205_v26  ;;  %v548_v26 = vld [vmem:[#allocation3 + $0x730] sm:$0xff] }
 0x1ec   :  { %v1247_v29 = vpack.c.bf16 %v548_v26, %v546_v25 }
 0x1ee   :  { %1208 = vmatpush1.bf16.msra.mxu1 %v1207_v31  ;;  %v550_v31 = vld [vmem:[#allocation3 + $0x740] sm:$0xff] }
 0x1ef   :  { %1210 = vmatprep.subr.bf16.mxu1 %v1209_v32  ;;  %v552_v32 = vld [vmem:[#allocation3 + $0x750] sm:$0xff] }
 0x1f0   :  { %v1251_v35 = vpack.c.bf16 %v552_v32, %v550_v31 }
 0x1f1   :  { %783 = vmatmul.mubr.f32.vlgmr.msra.gmra.mrb[0].mxu1 %v314_v41 }
 0x1f2   :  { %1212 = vmatpush1.bf16.msra.mxu1 %v1211_v37  ;;  %853 = vmatprep.mubr.f32.mxu1 %v317_v44  ;;  %v554_v37 = vld [vmem:[#allocation3 + $0x760] sm:$0xff]  ;;  %v560_v44 = vld [vmem:[#allocation3 + $0x790] sm:$0xff] }
 0x1f3   :  { %1214 = vmatprep.subr.bf16.mxu1 %v1213_v38  ;;  %v556_v38 = vld [vmem:[#allocation3 + $0x770] sm:$0xff]  ;;  %v1259_v47 = vpack.c.bf16 %v560_v44, %v558_v43 }
 0x1f4   :  { %v1255_v41 = vpack.c.bf16 %v556_v38, %v554_v37 }
 0x1f6   :  { %1216 = vmatpush1.bf16.msra.mxu1 %v1215_v45  ;;  %v563_v45 = vld [vmem:[#allocation3 + $0x7a8] sm:$0xff] }
 0x1f7   :  { %1218 = vmatprep.subr.bf16.mxu1 %v1217_v46  ;;  %v565_v46 = vld [vmem:[#allocation3 + $0x7b8] sm:$0xff] }
 0x1f8   :  { %v1261_v48 = vpack.c.bf16 %v565_v46, %v563_v45 }
 0x1fa   :  { %1220 = vmatpush1.bf16.msra.mxu1 %v1219_v51  ;;  %v567_v51 = vld [vmem:[#allocation3 + $0x7c8] sm:$0xff] }
 0x1fb   :  { %1222 = vmatprep.subr.bf16.mxu1 %v1221_v52  ;;  %v569_v52 = vld [vmem:[#allocation3 + $0x7d8] sm:$0xff] }
 0x1fc   :  { %v1265_v54 = vpack.c.bf16 %v569_v52, %v567_v51 }
 0x1fe   :  { %1224 = vmatpush1.bf16.msra.mxu1 %v1223_v57  ;;  %v571_v57 = vld [vmem:[#allocation3 + $0x7e8] sm:$0xff] }
 0x1ff   :  { %1226 = vmatprep.subr.bf16.mxu1 %v1225_v58  ;;  %v573_v58 = vld [vmem:[#allocation3 + $0x7f8] sm:$0xff] }
 0x200   :  { %v1269_v60 = vpack.c.bf16 %v573_v58, %v571_v57 }
 0x202   :  { %1228 = vmatpush1.bf16.msra.mxu1 %v1227_v63  ;;  %v1271_v63 = vpack.c.bf16 %v572_v62, %v570_v61 }
 0x203   :  { %1230 = vmatprep.subr.bf16.mxu1 %v1229_v0  ;;  %v316_v0 = vld [vmem:[#allocation2 + $0x30] sm:$0xff] }
 0x206   :  { %1232 = vmatpush1.bf16.msra.mxu1 %v1231_v5 }
 0x207   :  { %1234 = vmatprep.subr.bf16.mxu1 %v1233_v6 }
 0x20a   :  { %1236 = vmatpush1.bf16.msra.mxu1 %v1235_v11 }
 0x20b   :  { %1238 = vmatprep.subr.bf16.mxu1 %v1237_v12 }
 0x20e   :  { %1240 = vmatpush1.bf16.msra.mxu1 %v1239_v17 }
 0x20f   :  { %1242 = vmatprep.subr.bf16.mxu1 %v1241_v18 }
 0x212   :  { %1244 = vmatpush1.bf16.msra.mxu1 %v1243_v23 }
 0x213   :  { %1246 = vmatprep.subr.bf16.mxu1 %v1245_v24 }
 0x216   :  { %1248 = vmatpush1.bf16.msra.mxu1 %v1247_v29 }
 0x217   :  { %1250 = vmatprep.subr.bf16.mxu1 %v1249_v30 }
 0x21a   :  { %1252 = vmatpush1.bf16.msra.mxu1 %v1251_v35 }
 0x21b   :  { %1254 = vmatprep.subr.bf16.mxu1 %v1253_v36 }
 0x21e   :  { %1256 = vmatpush1.bf16.msra.mxu1 %v1255_v41 }
 0x21f   :  { %1258 = vmatprep.subr.bf16.mxu1 %v1257_v42 }
 0x222   :  { %1260 = vmatpush1.bf16.msra.mxu1 %v1259_v47 }
 0x223   :  { %1262 = vmatprep.subr.bf16.mxu1 %v1261_v48 }
 0x226   :  { %1264 = vmatpush1.bf16.msra.mxu1 %v1263_v53 }
 0x227   :  { %1266 = vmatprep.subr.bf16.mxu1 %v1265_v54 }
 0x22a   :  { %1268 = vmatpush1.bf16.msra.mxu1 %v1267_v59 }
 0x22b   :  { %1270 = vmatprep.subr.bf16.mxu1 %v1269_v60 }
 0x22e   :  { %1272 = vmatpush1.bf16.msra.mxu1 %v1271_v63 }
 0x231   :  { %854 = vmatmul.mubr.f32.vlgmr.msra.gmra.mrb[0].mxu1 %v316_v0 }
 0x28c   :  { %v642_v1 = vpop.f32.mrb[8].mxu0 }
 0x28d   :  { %v644_v2 = vpop.f32.mrb[9].mxu0  ;;  %v643_v5 = vadd.f32 %v642_v1, %v574_v3 }
 0x28e   :  { %v645_v6 = vadd.f32 %v644_v2, %v575_v4 }
 0x304   :  { %v855_v7 = vpop.f32.mrb[0].mxu1 }
 0x305   :  { %v1274_v8 = vadd.f32 %v855_v7, %v643_v5  ;;  %v857_v9 = vpop.f32.mrb[1].mxu1 }
 0x306   :  { %v1276_v10 = vadd.f32 %v857_v9, %v645_v6 }
 0x307   :  { %860 = vst [vmem:[#allocation6] sm:$0xff] %v1274_v8 }
 0x308   :  { %861 = vst [vmem:[#allocation6 + $0x8] sm:$0xff] %v1276_v10 }
 0x309   :  { %1319 = shalt.err (!%p1316_p12)
}
 0x30a   :  { %s1320_s30 = scalar_lea.hbm %s1571_s4, 256 }
 0x30b   :  { %p1321_p13 = scmp.ne.s32.totalorder %s1571_s4, %s1320_s30  ;;  %p1324_p0 = scmp.lt.u32.totalorder %s1320_s30, %s1571_s4 }
 0x30d   :  { %p1326_p1 = pnand %p1324_p0, %p1321_p13 }
 0x30f   :  { %1329 = shalt.err (!%p1326_p1)
}
 0x310   :  { %871 = dma.vmem_to_hbm [thread:$0]  %s869_s27, 256, %s1571_s4, [#allocation5]  }
 0x311   :  { %1332 = dma.done.wait [#allocation5], 256  }
 0x312   :  { %1333 = vsyncadd [#allocation5], 4294967040 }
 0x313   :  { %875 = vsyncpa [#allocation4], 1 }
 0x314   :  { %876 = vsyncpa [#allocation5], 1 }

</bundles_post_ra>
